<compile_context>
chip_gen: v7x
topology: tpu7x:2x2x1
jax: 0.10.0
libtpu: 0.0.40
codegen_flags: <defaults>
</compile_context>

<pallas_src>
import functools

import jax
import jax.numpy as jnp
from jax.experimental import pallas as pl
from jax.experimental.pallas import tpu as pltpu

LANES = 128


def _round_up(x, m):
    return (x + m - 1) // m * m


# ----------------------------------------------------------------------------
# Kernel: fused (pad -> im2col(cache) -> single MXU matmul -> ReLU)
# grid = (batch, Cout tiles); scratch persists across grid steps.
# ----------------------------------------------------------------------------
def _conv_relu_kernel(x_ref, w_ref, o_ref, xp_ref, p_ref, *, KH, KW, dil, ph, pw):
    # x_ref : (1, H, W, Cin)        bf16  one batch element (NHWC)
    # w_ref : (K_p, TCO)            bf16  im2col-ordered weights, densely packed K
    # o_ref : (1, Hout, Wout, TCO)  f32   lane-dense output tile
    # xp_ref: (Hp, Wp, Cin)         f32   zero-padded input scratch (persistent)
    # p_ref : (HWo, K_p)            bf16  cached im2col patch matrix (persistent)
    _, H, W, Cin = x_ref.shape
    _, Hout, Wout, TCO = o_ref.shape
    HWo, K_p = p_ref.shape
    K_real = KH * KW * Cin

    # Build the padded input + patch cache once per batch element; every Cout
    # tile (inner grid axis j) of the same element reuses it.  Gating on the
    # inner axis keeps this correct under megacore sharding of the N axis.
    @pl.when(pl.program_id(1) == 0)
    def _build_patches():
        if (ph, pw) != (0, 0):
            # Halo stays zero afterwards; interior is overwritten below.
            xp_ref[...] = jnp.zeros_like(xp_ref)
        if K_p != K_real:
            # Zero the padded tail of the contraction dim (weight rows there
            # are also zero; keep both sides clean).
            p_ref[...] = jnp.zeros_like(p_ref)
        xp_ref[pl.ds(ph, H), pl.ds(pw, W), :] = x_ref[0].astype(xp_ref.dtype)

        # im2col: one (HWo, Cin) slab per tap, cast to bf16 and written at its
        # dense column offset (K packed jointly -> one deep matmul below).
        for kh in range(KH):
            for kw in range(KW):
                idx = kh * KW + kw
                piece = xp_ref[pl.ds(kh * dil, Hout), pl.ds(kw * dil, Wout), :]
                p_ref[:, idx * Cin:(idx + 1) * Cin] = (
                    piece.reshape(HWo, Cin).astype(p_ref.dtype))

    # One deep-K MXU matmul per Cout tile, f32 accumulation, fused ReLU.
    acc = jnp.dot(p_ref[...], w_ref[...], preferred_element_type=jnp.float32)
    acc = jnp.maximum(acc, 0.0)
    o_ref[0] = acc.reshape(Hout, Wout, TCO).astype(o_ref.dtype)


# ----------------------------------------------------------------------------
# Public wrapper: NCHW in / NCHW out, matching BasicConv2d1.forward semantics.
# ----------------------------------------------------------------------------
def conv2d_relu(x_nchw, w_hwio, *, padding=0, dilation=1):
    """relu(conv2d(x, w, bias=None, stride=1, padding, dilation))."""
    assert isinstance(padding, int) and isinstance(dilation, int)
    N, Cin, H, W = x_nchw.shape
    KH, KW, wcin, Cout = w_hwio.shape
    assert wcin == Cin

    ph = pw = padding
    dil = dilation
    Hp, Wp = H + 2 * ph, W + 2 * pw
    Hout = Hp - dil * (KH - 1)
    Wout = Wp - dil * (KW - 1)
    assert Hout > 0 and Wout > 0
    HWo = Hout * Wout

    # Densely packed contraction dim: KH*KW*Cin -> next multiple of 128.
    K_real = KH * KW * Cin
    K_p = _round_up(K_real, LANES)

    # Output-channel tile: 256 fills the 256-wide MXU (v6e/v7x) when Cout is
    # large enough; otherwise a single lane group.
    TCO = 256 if _round_up(Cout, LANES) % 256 == 0 else LANES
    Cout_p = _round_up(Cout, TCO)

    # NCHW -> NHWC, bf16 (operands are bf16 at the MXU anyway; halves the DMA).
    x = jnp.transpose(x_nchw, (0, 2, 3, 1)).astype(jnp.bfloat16)

    # Weights: (KH,KW,Cin,Cout) -> dense im2col (KH*KW*Cin, Cout), zero-pad to
    # (K_p, Cout_p), bf16.  Row order (kh, kw, c) matches the kernel's columns.
    w = w_hwio.astype(jnp.float32).reshape(K_real, Cout)
    w = jnp.pad(w, ((0, K_p - K_real), (0, Cout_p - Cout))).astype(jnp.bfloat16)

    kern = functools.partial(_conv_relu_kernel, KH=KH, KW=KW, dil=dil, ph=ph, pw=pw)

    out = pl.pallas_call(
        kern,
        out_shape=jax.ShapeDtypeStruct((N, Hout, Wout, Cout_p), jnp.float32),
        grid=(N, Cout_p // TCO),
        in_specs=[
            pl.BlockSpec((1, H, W, Cin), lambda n, j: (n, 0, 0, 0)),
            pl.BlockSpec((K_p, TCO), lambda n, j: (0, j)),
        ],
        out_specs=pl.BlockSpec((1, Hout, Wout, TCO), lambda n, j: (n, 0, 0, j)),
        scratch_shapes=[
            pltpu.VMEM((Hp, Wp, Cin), jnp.float32),   # zero-padded input
            pltpu.VMEM((HWo, K_p), jnp.bfloat16),     # cached im2col patches
        ],
        compiler_params=pltpu.CompilerParams(
            # N is independent (megacore-parallel); the Cout axis carries the
            # patch-cache dependency (j==0 builds, j>0 reuses) -> arbitrary.
            dimension_semantics=("parallel", "arbitrary")),
    )(x, w)

    out = out[..., :Cout]                      # drop Cout lane padding
    return jnp.transpose(out, (0, 3, 1, 2))    # NHWC -> NCHW


# ----------------------------------------------------------------------------
# Pure-JAX reference (correctness check only; same bf16-rounded operands the
# kernel feeds the MXU, f32 accumulation).
# ----------------------------------------------------------------------------
def _reference(x_nchw, w_hwio, padding, dilation):
    out = jax.lax.conv_general_dilated(
        x_nchw, jnp.transpose(w_hwio, (3, 2, 0, 1)),      # OIHW
        window_strides=(1, 1),
        padding=((padding, padding), (padding, padding)),
        rhs_dilation=(dilation, dilation),
        dimension_numbers=("NCHW", "OIHW", "NCHW"),
        precision=jax.lax.Precision.HIGHEST)
    return jnp.maximum(out, 0.0)


# ----------------------------------------------------------------------------
if __name__ == "__main__":
    key = jax.random.PRNGKey(0)
    kx, kw = jax.random.split(key)

    # BasicConv2d1(in_channels=4, out_channels=32, kernel_size=3, padding=1)
    N, Cin, H, W = 2, 4, 16, 16
    Cout, K, pad, dil = 32, 3, 1, 1

    x = jax.random.normal(kx, (N, Cin, H, W), jnp.float32)
    w = jax.random.normal(kw, (K, K, Cin, Cout), jnp.float32) * (2.0 / (K * K * Cin)) ** 0.5

    fwd = jax.jit(functools.partial(conv2d_relu, padding=pad, dilation=dil))
    out = fwd(x, w)
    jax.block_until_ready(out)

    assert out.shape == (N, Cout, H, W), out.shape
    assert bool(jnp.all(jnp.isfinite(out)))
    assert bool(jnp.all(out >= 0.0))  # ReLU

    # Compare against an f32 reference run on the same bf16-rounded operands
    # the kernel feeds the MXU (inputs bf16, accumulation f32).  Error vs the
    # exact f32 PyTorch conv would be larger (bf16 operand rounding).
    xb = x.astype(jnp.bfloat16).astype(jnp.float32)
    wb = w.astype(jnp.bfloat16).astype(jnp.float32)
    ref = _reference(xb, wb, pad, dil)
    err = float(jnp.max(jnp.abs(out - ref)))
    assert err < 1e-3, err

    print("KERNEL_OK")
</pallas_src>

<mosaic_0001>
module attributes {stable_mosaic.version = 11 : i64} {
  func.func @_conv_relu_kernel(%arg0: i32, %arg1: i32, %arg2: memref<1x16x16x4xbf16, #tpu.memory_space<vmem>>, %arg3: memref<128x128xbf16, #tpu.memory_space<vmem>>, %arg4: memref<1x16x16x128xf32, #tpu.memory_space<vmem>>, %arg5: memref<18x18x4xf32, #tpu.memory_space<vmem>>, %arg6: memref<256x128xbf16, #tpu.memory_space<vmem>>) attributes {dimension_semantics = [#tpu.dimension_semantics<parallel>, #tpu.dimension_semantics<arbitrary>], iteration_bounds = array<i64: 2, 1>, scalar_prefetch = 0 : i64, scratch_operands = 2 : i64, tpu.core_type = #tpu.core_type<tc>, window_params = [{transform_indices = @transform_0, window_bounds = array<i64: 1, 16, 16, 4>}, {transform_indices = @transform_1, window_bounds = array<i64: 128, 128>}, {transform_indices = @transform_2, window_bounds = array<i64: 1, 16, 16, 128>}]} {
    %c0_i32 = arith.constant 0 : i32
    %0 = arith.cmpi eq, %arg1, %c0_i32 : i32
    %1 = arith.extui %0 : i1 to i32
    %c0_i32_0 = arith.constant 0 : i32
    %2 = arith.cmpi ne, %1, %c0_i32_0 : i32
    scf.if %2 {
      %cst_9 = arith.constant 0.000000e+00 : f32
      %12 = vector.broadcast %cst_9 : f32 to vector<18x18x4xf32>
      %c0_10 = arith.constant 0 : index
      %c0_11 = arith.constant 0 : index
      %c0_12 = arith.constant 0 : index
      %13 = vector.load %arg5[%c0_10, %c0_11, %c0_12] : memref<18x18x4xf32, #tpu.memory_space<vmem>>, vector<18x18x4xf32>
      tpu.vector_store %arg5[%c0_10, %c0_11, %c0_12], %12 {strides = array<i32>} : memref<18x18x4xf32, #tpu.memory_space<vmem>>, vector<18x18x4xf32>,
      %cst_13 = arith.constant 0.000000e+00 : bf16
      %14 = vector.broadcast %cst_13 : bf16 to vector<256x128xbf16>
      %c0_14 = arith.constant 0 : index
      %c0_15 = arith.constant 0 : index
      %15 = vector.load %arg6[%c0_14, %c0_15] : memref<256x128xbf16, #tpu.memory_space<vmem>>, vector<256x128xbf16>
      tpu.vector_store %arg6[%c0_14, %c0_15], %14 {strides = array<i32>} : memref<256x128xbf16, #tpu.memory_space<vmem>>, vector<256x128xbf16>,
      %c0_16 = arith.constant 0 : index
      %c0_17 = arith.constant 0 : index
      %c0_18 = arith.constant 0 : index
      %c0_19 = arith.constant 0 : index
      %16 = vector.load %arg2[%c0_16, %c0_17, %c0_18, %c0_19] : memref<1x16x16x4xbf16, #tpu.memory_space<vmem>>, vector<1x16x16x4xbf16>
      %17 = vector.shape_cast %16 : vector<1x16x16x4xbf16> to vector<16x16x4xbf16>
      %18 = arith.extf %17 : vector<16x16x4xbf16> to vector<16x16x4xf32>
      %c1 = arith.constant 1 : index
      %c1_20 = arith.constant 1 : index
      %c0_21 = arith.constant 0 : index
      %19 = vector.load %arg5[%c1, %c1_20, %c0_21] : memref<18x18x4xf32, #tpu.memory_space<vmem>>, vector<16x16x4xf32>
      tpu.vector_store %arg5[%c1, %c1_20, %c0_21], %18 {strides = array<i32>} : memref<18x18x4xf32, #tpu.memory_space<vmem>>, vector<16x16x4xf32>,
      %c0_22 = arith.constant 0 : index
      %c0_23 = arith.constant 0 : index
      %c0_24 = arith.constant 0 : index
      %20 = vector.load %arg5[%c0_22, %c0_23, %c0_24] : memref<18x18x4xf32, #tpu.memory_space<vmem>>, vector<16x16x4xf32>
      %21 = vector.shape_cast %20 : vector<16x16x4xf32> to vector<256x4xf32>
      %22 = arith.truncf %21 : vector<256x4xf32> to vector<256x4xbf16>
      %c0_25 = arith.constant 0 : index
      %c0_26 = arith.constant 0 : index
      %23 = vector.load %arg6[%c0_25, %c0_26] : memref<256x128xbf16, #tpu.memory_space<vmem>>, vector<256x4xbf16>
      tpu.vector_store %arg6[%c0_25, %c0_26], %22 {strides = array<i32>} : memref<256x128xbf16, #tpu.memory_space<vmem>>, vector<256x4xbf16>,
      %c0_27 = arith.constant 0 : index
      %c1_28 = arith.constant 1 : index
      %c0_29 = arith.constant 0 : index
      %24 = vector.load %arg5[%c0_27, %c1_28, %c0_29] : memref<18x18x4xf32, #tpu.memory_space<vmem>>, vector<16x16x4xf32>
      %25 = vector.shape_cast %24 : vector<16x16x4xf32> to vector<256x4xf32>
      %26 = arith.truncf %25 : vector<256x4xf32> to vector<256x4xbf16>
      %c0_30 = arith.constant 0 : index
      %c4 = arith.constant 4 : index
      %27 = vector.load %arg6[%c0_30, %c4] : memref<256x128xbf16, #tpu.memory_space<vmem>>, vector<256x4xbf16>
      tpu.vector_store %arg6[%c0_30, %c4], %26 {strides = array<i32>} : memref<256x128xbf16, #tpu.memory_space<vmem>>, vector<256x4xbf16>,
      %c0_31 = arith.constant 0 : index
      %c2 = arith.constant 2 : index
      %c0_32 = arith.constant 0 : index
      %28 = vector.load %arg5[%c0_31, %c2, %c0_32] : memref<18x18x4xf32, #tpu.memory_space<vmem>>, vector<16x16x4xf32>
      %29 = vector.shape_cast %28 : vector<16x16x4xf32> to vector<256x4xf32>
      %30 = arith.truncf %29 : vector<256x4xf32> to vector<256x4xbf16>
      %c0_33 = arith.constant 0 : index
      %c8 = arith.constant 8 : index
      %31 = vector.load %arg6[%c0_33, %c8] : memref<256x128xbf16, #tpu.memory_space<vmem>>, vector<256x4xbf16>
      tpu.vector_store %arg6[%c0_33, %c8], %30 {strides = array<i32>} : memref<256x128xbf16, #tpu.memory_space<vmem>>, vector<256x4xbf16>,
      %c1_34 = arith.constant 1 : index
      %c0_35 = arith.constant 0 : index
      %c0_36 = arith.constant 0 : index
      %32 = vector.load %arg5[%c1_34, %c0_35, %c0_36] : memref<18x18x4xf32, #tpu.memory_space<vmem>>, vector<16x16x4xf32>
      %33 = vector.shape_cast %32 : vector<16x16x4xf32> to vector<256x4xf32>
      %34 = arith.truncf %33 : vector<256x4xf32> to vector<256x4xbf16>
      %c0_37 = arith.constant 0 : index
      %c12 = arith.constant 12 : index
      %35 = vector.load %arg6[%c0_37, %c12] : memref<256x128xbf16, #tpu.memory_space<vmem>>, vector<256x4xbf16>
      tpu.vector_store %arg6[%c0_37, %c12], %34 {strides = array<i32>} : memref<256x128xbf16, #tpu.memory_space<vmem>>, vector<256x4xbf16>,
      %c1_38 = arith.constant 1 : index
      %c1_39 = arith.constant 1 : index
      %c0_40 = arith.constant 0 : index
      %36 = vector.load %arg5[%c1_38, %c1_39, %c0_40] : memref<18x18x4xf32, #tpu.memory_space<vmem>>, vector<16x16x4xf32>
      %37 = vector.shape_cast %36 : vector<16x16x4xf32> to vector<256x4xf32>
      %38 = arith.truncf %37 : vector<256x4xf32> to vector<256x4xbf16>
      %c0_41 = arith.constant 0 : index
      %c16 = arith.constant 16 : index
      %39 = vector.load %arg6[%c0_41, %c16] : memref<256x128xbf16, #tpu.memory_space<vmem>>, vector<256x4xbf16>
      tpu.vector_store %arg6[%c0_41, %c16], %38 {strides = array<i32>} : memref<256x128xbf16, #tpu.memory_space<vmem>>, vector<256x4xbf16>,
      %c1_42 = arith.constant 1 : index
      %c2_43 = arith.constant 2 : index
      %c0_44 = arith.constant 0 : index
      %40 = vector.load %arg5[%c1_42, %c2_43, %c0_44] : memref<18x18x4xf32, #tpu.memory_space<vmem>>, vector<16x16x4xf32>
      %41 = vector.shape_cast %40 : vector<16x16x4xf32> to vector<256x4xf32>
      %42 = arith.truncf %41 : vector<256x4xf32> to vector<256x4xbf16>
      %c0_45 = arith.constant 0 : index
      %c20 = arith.constant 20 : index
      %43 = vector.load %arg6[%c0_45, %c20] : memref<256x128xbf16, #tpu.memory_space<vmem>>, vector<256x4xbf16>
      tpu.vector_store %arg6[%c0_45, %c20], %42 {strides = array<i32>} : memref<256x128xbf16, #tpu.memory_space<vmem>>, vector<256x4xbf16>,
      %c2_46 = arith.constant 2 : index
      %c0_47 = arith.constant 0 : index
      %c0_48 = arith.constant 0 : index
      %44 = vector.load %arg5[%c2_46, %c0_47, %c0_48] : memref<18x18x4xf32, #tpu.memory_space<vmem>>, vector<16x16x4xf32>
      %45 = vector.shape_cast %44 : vector<16x16x4xf32> to vector<256x4xf32>
      %46 = arith.truncf %45 : vector<256x4xf32> to vector<256x4xbf16>
      %c0_49 = arith.constant 0 : index
      %c24 = arith.constant 24 : index
      %47 = vector.load %arg6[%c0_49, %c24] : memref<256x128xbf16, #tpu.memory_space<vmem>>, vector<256x4xbf16>
      tpu.vector_store %arg6[%c0_49, %c24], %46 {strides = array<i32>} : memref<256x128xbf16, #tpu.memory_space<vmem>>, vector<256x4xbf16>,
      %c2_50 = arith.constant 2 : index
      %c1_51 = arith.constant 1 : index
      %c0_52 = arith.constant 0 : index
      %48 = vector.load %arg5[%c2_50, %c1_51, %c0_52] : memref<18x18x4xf32, #tpu.memory_space<vmem>>, vector<16x16x4xf32>
      %49 = vector.shape_cast %48 : vector<16x16x4xf32> to vector<256x4xf32>
      %50 = arith.truncf %49 : vector<256x4xf32> to vector<256x4xbf16>
      %c0_53 = arith.constant 0 : index
      %c28 = arith.constant 28 : index
      %51 = vector.load %arg6[%c0_53, %c28] : memref<256x128xbf16, #tpu.memory_space<vmem>>, vector<256x4xbf16>
      tpu.vector_store %arg6[%c0_53, %c28], %50 {strides = array<i32>} : memref<256x128xbf16, #tpu.memory_space<vmem>>, vector<256x4xbf16>,
      %c2_54 = arith.constant 2 : index
      %c2_55 = arith.constant 2 : index
      %c0_56 = arith.constant 0 : index
      %52 = vector.load %arg5[%c2_54, %c2_55, %c0_56] : memref<18x18x4xf32, #tpu.memory_space<vmem>>, vector<16x16x4xf32>
      %53 = vector.shape_cast %52 : vector<16x16x4xf32> to vector<256x4xf32>
      %54 = arith.truncf %53 : vector<256x4xf32> to vector<256x4xbf16>
      %c0_57 = arith.constant 0 : index
      %c32 = arith.constant 32 : index
      %55 = vector.load %arg6[%c0_57, %c32] : memref<256x128xbf16, #tpu.memory_space<vmem>>, vector<256x4xbf16>
      tpu.vector_store %arg6[%c0_57, %c32], %54 {strides = array<i32>} : memref<256x128xbf16, #tpu.memory_space<vmem>>, vector<256x4xbf16>,
    } else {
    }
    %c0 = arith.constant 0 : index
    %c0_1 = arith.constant 0 : index
    %3 = vector.load %arg6[%c0, %c0_1] : memref<256x128xbf16, #tpu.memory_space<vmem>>, vector<256x128xbf16>
    %c0_2 = arith.constant 0 : index
    %c0_3 = arith.constant 0 : index
    %4 = vector.load %arg3[%c0_2, %c0_3] : memref<128x128xbf16, #tpu.memory_space<vmem>>, vector<128x128xbf16>
    %cst = arith.constant dense<0.000000e+00> : vector<256x128xf32>
    %5 = tpu.matmul %3, %4, %cst {dimension_numbers = #tpu.dot_dimension_numbers<[1], [0], [0], [1], [0, 0, 1, 1], [], []>} : vector<256x128xbf16>, vector<128x128xbf16>, vector<256x128xf32> -> vector<256x128xf32>
    %cst_4 = arith.constant 0.000000e+00 : f32
    %6 = vector.broadcast %cst_4 : f32 to vector<256x128xf32>
    %7 = arith.maximumf %5, %6 : vector<256x128xf32>
    %8 = vector.shape_cast %7 : vector<256x128xf32> to vector<16x16x128xf32>
    %c0_5 = arith.constant 0 : index
    %c0_6 = arith.constant 0 : index
    %c0_7 = arith.constant 0 : index
    %c0_8 = arith.constant 0 : index
    %9 = vector.load %arg4[%c0_5, %c0_6, %c0_7, %c0_8] : memref<1x16x16x128xf32, #tpu.memory_space<vmem>>, vector<1x16x16x128xf32>
    %10 = vector.shape_cast %9 : vector<1x16x16x128xf32> to vector<16x16x128xf32>
    %11 = vector.shape_cast %8 : vector<16x16x128xf32> to vector<1x16x16x128xf32>
    tpu.vector_store %arg4[%c0_5, %c0_6, %c0_7, %c0_8], %11 {strides = array<i32>} : memref<1x16x16x128xf32, #tpu.memory_space<vmem>>, vector<1x16x16x128xf32>,
    return
  }
  func.func @transform_0(%arg0: i32, %arg1: i32) -> (i32, i32, i32, i32) {
    %c0_i32 = arith.constant 0 : i32
    %c0_i32_0 = arith.constant 0 : i32
    %c0_i32_1 = arith.constant 0 : i32
    %c0_i32_2 = arith.constant 0 : i32
    return %arg0, %c0_i32, %c0_i32_0, %c0_i32_1 : i32, i32, i32, i32
  }
  func.func @transform_1(%arg0: i32, %arg1: i32) -> (i32, i32) {
    %c0_i32 = arith.constant 0 : i32
    %c0_i32_0 = arith.constant 0 : i32
    return %c0_i32, %arg1 : i32, i32
  }
  func.func @transform_2(%arg0: i32, %arg1: i32) -> (i32, i32, i32, i32) {
    %c0_i32 = arith.constant 0 : i32
    %c0_i32_0 = arith.constant 0 : i32
    %c0_i32_1 = arith.constant 0 : i32
    return %arg0, %c0_i32, %c0_i32_0, %arg1 : i32, i32, i32, i32
  }
}

</mosaic_0001>

<bundles_post_ra>
// kernel: conv2d_relu.1
= control target key start
LH: loop header
LB: loop body
LE: loop exit
PB: predicated region body
PF: predicated region fallthrough
CT: control target
= control target key end

     0   :  { %s2130_s9 = smov 0   ;;  %s2132_s10 = smov 0   ;;  %s2776_s0 = inlined_call_operand.vmem [shape: bf16[2,16,16,4], index: 0, kind: input, shape index: {}]   ;;  %s2777_s1 = inlined_call_operand.vmem [shape: bf16[128,128], index: 1, kind: input, shape index: {}]   ;;  %s2778_s2 = inlined_call_operand.vmem [shape: f32[2,16,16,128], index: 2, kind: output, shape index: {}]  }
   0x1   :  { %s2134_s11 = smov 0  }
   0x2 LB: > { %s24_s12 = sadd.s32 1, %s2099_s10  ;;  %p1855_p0 = scmp.ge.s32.totalorder %s2103_s11, 1  ;;  %s2103_s11 = sphi %s2134_s11, %s12_s11   ;;  %s2099_s10 = sphi %s2132_s10, %s2780_s10   ;;  %s2095_s9 = sphi %s2130_s9, %s2779_s9  }
   0x3   : > { %p26_p1 = scmp.ge.s32.totalorder %s24_s12, 2  ;;  %p135_p2 = scmp.lt.s32.totalorder %s2103_s11, 3 }
   0x5   : > { %s2782_s12 = smov (%p26_p1, %s24_s12), 0  ;;  %p136_p3 = pnand %p1855_p0, %p135_p2 }
   0x6   : > { %vm186_vm0 = vcmask (!%p136_p3), 31744   ;;  %vm189_vm1 = vcmask (!%p136_p3), 25600   ;;  %p164_p4 = scmp.lt.s32.totalorder (!%p136_p3), %s2095_s9, 1  ;;  %v2105_v0 = vmov (!%p136_p3), 0.0   ;;  %v2106_v1 = vmov (!%p136_p3), 0   ;;  %s2107_s17 = smov (!%p136_p3), 4  }
   0x7   : > { %139 = sbr.rel (%p136_p3) target bundleno = 645 (0x285), region = 28  ;;  %187 = vst.msk [vmem:[#allocation2] sm:$0xff] (!%p136_p3), %vm186_vm0, %v2105_v0  ;;  %188 = vst.msk [vmem:[#allocation2 + $0x8] sm:$0xff] (!%p136_p3), %vm186_vm0, %v2105_v0  ;;  %s2108_s18 = smov (!%p136_p3), 8   ;;  %vm531_vm2 = vcmask (!%p136_p3), 64544   ;;  %vm660_vm3 = vcmask (!%p136_p3), 97344  }
   0x8   : > { %190 = vst.msk [vmem:[#allocation2 + $0x10] sm:$0x3] (!%p136_p3), %vm189_vm1, %v2105_v0  ;;  %193 = vst.msk [vmem:[#allocation2 + $0x28] sm:$0x3] (!%p136_p3), %vm189_vm1, %v2105_v0  ;;  %s2109_s19 = smov (!%p136_p3), 12   ;;  %s2110_s20 = smov (!%p136_p3), 16  }
   0x9   : > { %191 = vst.msk [vmem:[#allocation2 + $0x18] sm:$0xff] (!%p136_p3), %vm186_vm0, %v2105_v0  ;;  %192 = vst.msk [vmem:[#allocation2 + $0x20] sm:$0xff] (!%p136_p3), %vm186_vm0, %v2105_v0  ;;  %s2111_s23 = smov (!%p136_p3), 20   ;;  %s2112_s28 = smov (!%p136_p3), 24   ;;  %vm789_vm4 = vcmask (!%p136_p3), 130144   ;;  %vm918_vm5 = vcmask (!%p136_p3), 162944  }
   0xa   : > { %194 = vst.msk [vmem:[#allocation2 + $0x30] sm:$0xff] (!%p136_p3), %vm186_vm0, %v2105_v0  ;;  %195 = vst.msk [vmem:[#allocation2 + $0x38] sm:$0xff] (!%p136_p3), %vm186_vm0, %v2105_v0  ;;  %s2113_s5 = smov (!%p136_p3), 28   ;;  %s2114_s14 = smov (!%p136_p3), 32   ;;  %vm1047_vm6 = vcmask (!%p136_p3), 195744   ;;  %vm1177_vm7 = vcmask (!%p136_p3), 228544  }
   0xb   : > { %196 = vst.msk [vmem:[#allocation2 + $0x40] sm:$0x3] (!%p136_p3), %vm189_vm1, %v2105_v0  ;;  %199 = vst.msk [vmem:[#allocation2 + $0x58] sm:$0x3] (!%p136_p3), %vm189_vm1, %v2105_v0  ;;  %vm1306_vm8 = vcmask (!%p136_p3), 261344   ;;  %vm1435_vm9 = vcmask (!%p136_p3), 294144  }
   0xc   : > { %197 = vst.msk [vmem:[#allocation2 + $0x48] sm:$0xff] (!%p136_p3), %vm186_vm0, %v2105_v0  ;;  %198 = vst.msk [vmem:[#allocation2 + $0x50] sm:$0xff] (!%p136_p3), %vm186_vm0, %v2105_v0 }
   0xd   : > { %200 = vst.msk [vmem:[#allocation2 + $0x60] sm:$0xff] (!%p136_p3), %vm186_vm0, %v2105_v0  ;;  %201 = vst.msk [vmem:[#allocation2 + $0x68] sm:$0xff] (!%p136_p3), %vm186_vm0, %v2105_v0 }
   0xe   : > { %202 = vst.msk [vmem:[#allocation2 + $0x70] sm:$0x3] %vm189_vm1, %v2105_v0  ;;  %205 = vst.msk [vmem:[#allocation2 + $0x88] sm:$0x3] %vm189_vm1, %v2105_v0  ;;  %s2784_s9 = smov (!%p164_p4, %s2095_s9), 1  ;;  %v419_v12 = vld [vmem:[#allocation2 + $0x1] sm:$0xff] }
   0xf   : > { %203 = vst.msk [vmem:[#allocation2 + $0x78] sm:$0xff] %vm186_vm0, %v2105_v0  ;;  %204 = vst.msk [vmem:[#allocation2 + $0x80] sm:$0xff] %vm186_vm0, %v2105_v0  ;;  %s1870_s13 = sshll.u32 %s2784_s9, 7  ;;  %v420_v13 = vld [vmem:[#allocation2 + $0x9] sm:$0xff]  ;;  %v355_v38 = vld [vmem:[#allocation2] sm:$0xff] }
  0x10   : > { %206 = vst.msk [vmem:[#allocation2 + $0x90] sm:$0xff] %vm186_vm0, %v2105_v0  ;;  %207 = vst.msk [vmem:[#allocation2 + $0x98] sm:$0xff] %vm186_vm0, %v2105_v0  ;;  %s2214_s16 = scalar_lea.vmem %s2776_s0, %s1870_s13  ;;  %v548_v14 = vld [vmem:[#allocation2 + $0x2] sm:$0xff]  ;;  %v451_v19 = vpack.c.bf16 %v420_v13, %v419_v12  ;;  %v549_v20 = vld [vmem:[#allocation2 + $0xa] sm:$0xff] }
  0x11   : > { %208 = vst.msk [vmem:[#allocation2 + $0xa0] sm:$0x3] %vm189_vm1, %v2105_v0  ;;  %211 = vst.msk [vmem:[#allocation2 + $0xb8] sm:$0x3] %vm189_vm1, %v2105_v0  ;;  %v1873_v2 = vld [vmem:[%s2214_s16] sm:$0xff]   ;;  %v1942_v4 = vld [vmem:[%s2214_s16 + $0x38] sm:$0xff]   ;;  %v580_v26 = vpack.c.bf16 %v549_v20, %v548_v14 }
  0x12   : > { %209 = vst.msk [vmem:[#allocation2 + $0xa8] sm:$0xff] %vm186_vm0, %v2105_v0  ;;  %210 = vst.msk [vmem:[#allocation2 + $0xb0] sm:$0xff] %vm186_vm0, %v2105_v0  ;;  %v1943_v3 = vld [vmem:[%s2214_s16 + $0x40] sm:$0xff]   ;;  %v1874_v5 = vunpack.c.l.bf16 %v1873_v2  ;;  %v1875_v6 = vunpack.c.h.bf16 %v1873_v2  ;;  %v1936_v9 = vld [vmem:[%s2214_s16 + $0x8] sm:$0xff]   ;;  %v1902_v15 = vunpack.c.l.bf16 %v1942_v4  ;;  %v1903_v16 = vunpack.c.h.bf16 %v1942_v4  ;;  %483 = vrot.lane.b32.xlu0 %v451_v19, %s2107_s17 }
  0x13   : > { %212 = vst.msk [vmem:[#allocation2 + $0xc0] sm:$0xff] %vm186_vm0, %v2105_v0  ;;  %213 = vst.msk [vmem:[#allocation2 + $0xc8] sm:$0xff] %vm186_vm0, %v2105_v0  ;;  %v1906_v7 = vunpack.c.l.bf16 %v1943_v3  ;;  %v1907_v8 = vunpack.c.h.bf16 %v1943_v3  ;;  %v1944_v10 = vld [vmem:[%s2214_s16 + $0x48] sm:$0xff]   ;;  %v1937_v11 = vld [vmem:[%s2214_s16 + $0x10] sm:$0xff]   ;;  %v1878_v17 = vunpack.c.l.bf16 %v1936_v9  ;;  %v1879_v18 = vunpack.c.h.bf16 %v1936_v9 }
  0x14   : > { %214 = vst.msk [vmem:[#allocation2 + $0xd0] sm:$0x3] %vm189_vm1, %v2105_v0  ;;  %217 = vst.msk [vmem:[#allocation2 + $0xe8] sm:$0x3] %vm189_vm1, %v2105_v0  ;;  %v1910_v21 = vunpack.c.l.bf16 %v1944_v10  ;;  %v1911_v22 = vunpack.c.h.bf16 %v1944_v10  ;;  %v1882_v23 = vunpack.c.l.bf16 %v1937_v11  ;;  %v1945_v24 = vld [vmem:[%s2214_s16 + $0x50] sm:$0xff]   ;;  %v1938_v25 = vld [vmem:[%s2214_s16 + $0x18] sm:$0xff]   ;;  %v1883_v27 = vunpack.c.h.bf16 %v1937_v11 }
  0x15   : > { %215 = vst.msk [vmem:[#allocation2 + $0xd8] sm:$0xff] %vm186_vm0, %v2105_v0  ;;  %216 = vst.msk [vmem:[#allocation2 + $0xe0] sm:$0xff] %vm186_vm0, %v2105_v0  ;;  %v1914_v28 = vunpack.c.l.bf16 %v1945_v24  ;;  %v1915_v29 = vunpack.c.h.bf16 %v1945_v24  ;;  %v1946_v30 = vld [vmem:[%s2214_s16 + $0x58] sm:$0xff]   ;;  %v1939_v31 = vld [vmem:[%s2214_s16 + $0x20] sm:$0xff]   ;;  %v1886_v33 = vunpack.c.l.bf16 %v1938_v25  ;;  %v1887_v34 = vunpack.c.h.bf16 %v1938_v25 }
  0x16   : > { %218 = vst.msk [vmem:[#allocation2 + $0xf0] sm:$0xff] %vm186_vm0, %v2105_v0  ;;  %219 = vst.msk [vmem:[#allocation2 + $0xf8] sm:$0xff] %vm186_vm0, %v2105_v0  ;;  %v1947_v32 = vld [vmem:[%s2214_s16 + $0x60] sm:$0xff]   ;;  %v1918_v35 = vunpack.c.l.bf16 %v1946_v30  ;;  %v1919_v36 = vunpack.c.h.bf16 %v1946_v30  ;;  %v356_v37 = vld [vmem:[#allocation2 + $0x8] sm:$0xff]  ;;  %v1890_v39 = vunpack.c.l.bf16 %v1939_v31  ;;  %v1891_v40 = vunpack.c.h.bf16 %v1939_v31  ;;  %612 = vrot.lane.b32.xlu0 %v580_v26, %s2108_s18 }
  0x17   : > { %220 = vst.msk [vmem:[#allocation2 + $0x100] sm:$0x3] %vm189_vm1, %v2105_v0  ;;  %223 = vst.msk [vmem:[#allocation2 + $0x118] sm:$0x3] %vm189_vm1, %v2105_v0  ;;  %v1922_v41 = vunpack.c.l.bf16 %v1947_v32  ;;  %v1923_v42 = vunpack.c.h.bf16 %v1947_v32  ;;  %v387_v43 = vpack.c.bf16 %v356_v37, %v355_v38  ;;  %v2073_v32 = vld [vmem:[%s2777_s1] sm:$0xff]   ;;  %v1941_v38 = vld [vmem:[%s2214_s16 + $0x30] sm:$0xff]  }
  0x18   : > { %221 = vst.msk [vmem:[#allocation2 + $0x108] sm:$0xff] %vm186_vm0, %v2105_v0  ;;  %222 = vst.msk [vmem:[#allocation2 + $0x110] sm:$0xff] %vm186_vm0, %v2105_v0  ;;  %1975 = vmatprep.subr.bf16.mxu0 %v2073_v32  ;;  %2023 = vmatprep.subr.bf16.mxu1 %v2073_v32 }
  0x19   : > { %224 = vst.msk [vmem:[#allocation2 + $0x120] sm:$0xff] %vm186_vm0, %v2105_v0  ;;  %225 = vst.msk [vmem:[#allocation2 + $0x128] sm:$0xff] %vm186_vm0, %v2105_v0  ;;  %1976 = vmatpush3.bf16.msra.mxu0 %v2073_v32  ;;  %2031 = vmatpush3.bf16.msra.mxu1 %v2073_v32 }
  0x1a   : > { %226 = vst.msk [vmem:[#allocation2 + $0x130] sm:$0x3] %vm189_vm1, %v2105_v0  ;;  %229 = vst.msk [vmem:[#allocation2 + $0x148] sm:$0x3] %vm189_vm1, %v2105_v0 }
  0x1b   : > { %227 = vst.msk [vmem:[#allocation2 + $0x138] sm:$0xff] %vm186_vm0, %v2105_v0  ;;  %228 = vst.msk [vmem:[#allocation2 + $0x140] sm:$0xff] %vm186_vm0, %v2105_v0 }
  0x1c   : > { %230 = vst.msk [vmem:[#allocation2 + $0x150] sm:$0xff] %vm186_vm0, %v2105_v0  ;;  %231 = vst.msk [vmem:[#allocation2 + $0x158] sm:$0xff] %vm186_vm0, %v2105_v0 }
  0x1d   : > { %232 = vst.msk [vmem:[#allocation2 + $0x160] sm:$0x3] %vm189_vm1, %v2105_v0  ;;  %235 = vst.msk [vmem:[#allocation2 + $0x178] sm:$0x3] %vm189_vm1, %v2105_v0 }
  0x1e   : > { %233 = vst.msk [vmem:[#allocation2 + $0x168] sm:$0xff] %vm186_vm0, %v2105_v0  ;;  %234 = vst.msk [vmem:[#allocation2 + $0x170] sm:$0xff] %vm186_vm0, %v2105_v0 }
  0x1f   : > { %236 = vst.msk [vmem:[#allocation2 + $0x180] sm:$0xff] %vm186_vm0, %v2105_v0  ;;  %237 = vst.msk [vmem:[#allocation2 + $0x188] sm:$0xff] %vm186_vm0, %v2105_v0 }
  0x20   : > { %238 = vst.msk [vmem:[#allocation2 + $0x190] sm:$0x3] %vm189_vm1, %v2105_v0  ;;  %241 = vst.msk [vmem:[#allocation2 + $0x1a8] sm:$0x3] %vm189_vm1, %v2105_v0 }
  0x21   : > { %239 = vst.msk [vmem:[#allocation2 + $0x198] sm:$0xff] %vm186_vm0, %v2105_v0  ;;  %240 = vst.msk [vmem:[#allocation2 + $0x1a0] sm:$0xff] %vm186_vm0, %v2105_v0 }
  0x22   : > { %242 = vst [vmem:[#allocation3] sm:$0xff] %v2106_v1  ;;  %243 = vst [vmem:[#allocation3 + $0x8] sm:$0xff] %v2106_v1 }
  0x23   : > { %244 = vst [vmem:[#allocation3 + $0x10] sm:$0xff] %v2106_v1  ;;  %245 = vst [vmem:[#allocation3 + $0x18] sm:$0xff] %v2106_v1 }
  0x24   : > { %246 = vst [vmem:[#allocation3 + $0x20] sm:$0xff] %v2106_v1  ;;  %247 = vst [vmem:[#allocation3 + $0x28] sm:$0xff] %v2106_v1 }
  0x25   : > { %248 = vst [vmem:[#allocation3 + $0x30] sm:$0xff] %v2106_v1  ;;  %249 = vst [vmem:[#allocation3 + $0x38] sm:$0xff] %v2106_v1 }
  0x26   : > { %250 = vst [vmem:[#allocation3 + $0x40] sm:$0xff] %v2106_v1  ;;  %251 = vst [vmem:[#allocation3 + $0x48] sm:$0xff] %v2106_v1 }
  0x27   : > { %252 = vst [vmem:[#allocation3 + $0x50] sm:$0xff] %v2106_v1  ;;  %253 = vst [vmem:[#allocation3 + $0x58] sm:$0xff] %v2106_v1 }
  0x28   : > { %254 = vst [vmem:[#allocation3 + $0x60] sm:$0xff] %v2106_v1  ;;  %255 = vst [vmem:[#allocation3 + $0x68] sm:$0xff] %v2106_v1 }
  0x29   : > { %256 = vst [vmem:[#allocation3 + $0x70] sm:$0xff] %v2106_v1  ;;  %257 = vst [vmem:[#allocation3 + $0x78] sm:$0xff] %v2106_v1 }
  0x2a   : > { %323 = vst.msk [vmem:[#allocation2 + $0x19] sm:$0xff] %vm186_vm0, %v1874_v5  ;;  %324 = vst.msk [vmem:[#allocation2 + $0x21] sm:$0xff] %vm186_vm0, %v1875_v6 }
  0x2b   : > { %339 = vst.msk [vmem:[#allocation2 + $0xd9] sm:$0xff] %vm186_vm0, %v1906_v7  ;;  %340 = vst.msk [vmem:[#allocation2 + $0xe1] sm:$0xff] %vm186_vm0, %v1907_v8 }
  0x2c   : > { %337 = vst.msk [vmem:[#allocation2 + $0xc1] sm:$0xff] %vm186_vm0, %v1902_v15  ;;  %338 = vst.msk [vmem:[#allocation2 + $0xc9] sm:$0xff] %vm186_vm0, %v1903_v16 }
  0x2d   : > { %325 = vst.msk [vmem:[#allocation2 + $0x31] sm:$0xff] %vm186_vm0, %v1878_v17  ;;  %326 = vst.msk [vmem:[#allocation2 + $0x39] sm:$0xff] %vm186_vm0, %v1879_v18 }
  0x2e   : > { %341 = vst.msk [vmem:[#allocation2 + $0xf1] sm:$0xff] %vm186_vm0, %v1910_v21  ;;  %342 = vst.msk [vmem:[#allocation2 + $0xf9] sm:$0xff] %vm186_vm0, %v1911_v22  ;;  %v1940_v22 = vld [vmem:[%s2214_s16 + $0x28] sm:$0xff]  }
  0x2f   : > { %327 = vst.msk [vmem:[#allocation2 + $0x49] sm:$0xff] %vm186_vm0, %v1882_v23  ;;  %328 = vst.msk [vmem:[#allocation2 + $0x51] sm:$0xff] %vm186_vm0, %v1883_v27  ;;  %v1948_v23 = vld [vmem:[%s2214_s16 + $0x68] sm:$0xff]   ;;  %v1894_v24 = vunpack.c.l.bf16 %v1940_v22  ;;  %v1895_v25 = vunpack.c.h.bf16 %v1940_v22 }
  0x30   : > { %343 = vst.msk [vmem:[#allocation2 + $0x109] sm:$0xff] %vm186_vm0, %v1914_v28  ;;  %344 = vst.msk [vmem:[#allocation2 + $0x111] sm:$0xff] %vm186_vm0, %v1915_v29  ;;  %v1926_v26 = vunpack.c.l.bf16 %v1948_v23  ;;  %v1927_v27 = vunpack.c.h.bf16 %v1948_v23 }
  0x31   : > { %329 = vst.msk [vmem:[#allocation2 + $0x61] sm:$0xff] %vm186_vm0, %v1886_v33  ;;  %330 = vst.msk [vmem:[#allocation2 + $0x69] sm:$0xff] %vm186_vm0, %v1887_v34  ;;  %v421_v44 = vld [vmem:[#allocation2 + $0x19] sm:$0xff]  ;;  %v422_v45 = vld [vmem:[#allocation2 + $0x21] sm:$0xff] }
  0x32   : > { %345 = vst.msk [vmem:[#allocation2 + $0x121] sm:$0xff] %vm186_vm0, %v1918_v35  ;;  %346 = vst.msk [vmem:[#allocation2 + $0x129] sm:$0xff] %vm186_vm0, %v1919_v36  ;;  %v437_v46 = vld [vmem:[#allocation2 + $0xd9] sm:$0xff]  ;;  %v452_v47 = vpack.c.bf16 %v422_v45, %v421_v44  ;;  %v438_v48 = vld [vmem:[#allocation2 + $0xe1] sm:$0xff] }
  0x33   : > { %331 = vst.msk [vmem:[#allocation2 + $0x79] sm:$0xff] %vm186_vm0, %v1890_v39  ;;  %332 = vst.msk [vmem:[#allocation2 + $0x81] sm:$0xff] %vm186_vm0, %v1891_v40  ;;  %v435_v49 = vld [vmem:[#allocation2 + $0xc1] sm:$0xff]  ;;  %v436_v50 = vld [vmem:[#allocation2 + $0xc9] sm:$0xff]  ;;  %v2253_v53 = vpack.c.bf16 %v438_v48, %v437_v46 }
  0x34   : > { %347 = vst.msk [vmem:[#allocation2 + $0x139] sm:$0xff] %vm186_vm0, %v1922_v41  ;;  %348 = vst.msk [vmem:[#allocation2 + $0x141] sm:$0xff] %vm186_vm0, %v1923_v42  ;;  %v459_v51 = vpack.c.bf16 %v436_v50, %v435_v49  ;;  %v550_v52 = vld [vmem:[#allocation2 + $0x1a] sm:$0xff]  ;;  %485 = vrot.lane.b32.xlu1 %v452_v47, %s2107_s17  ;;  %v564_v54 = vld [vmem:[#allocation2 + $0xc2] sm:$0xff]  ;;  %v1898_v42 = vunpack.c.l.bf16 %v1941_v38 }
  0x35   : > { %403 = vst.msk [vmem:[#allocation3] sm:$0xff] %vm186_vm0, %v387_v43  ;;  %v565_v55 = vld [vmem:[#allocation2 + $0xca] sm:$0xff]  ;;  %v551_v56 = vld [vmem:[#allocation2 + $0x22] sm:$0xff]  ;;  %v677_v58 = vld [vmem:[#allocation2 + $0x18] sm:$0xff]  ;;  %v1899_v43 = vunpack.c.h.bf16 %v1941_v38 }
  0x36   : > { %499 = vrot.lane.b32.xlu0 %v459_v51, %s2107_s17  ;;  %v2256_v57 = vpack.c.bf16 %v551_v56, %v550_v52  ;;  %v678_v59 = vld [vmem:[#allocation2 + $0x20] sm:$0xff]  ;;  %v693_v60 = vld [vmem:[#allocation2 + $0xd8] sm:$0xff]  ;;  %v679_v63 = vld [vmem:[#allocation2 + $0x30] sm:$0xff]  ;;  %v588_v3 = vpack.c.bf16 %v565_v55, %v564_v54  ;;  %333 = vst.msk [vmem:[#allocation2 + $0x91] sm:$0xff] %vm186_vm0, %v1894_v24 }
  0x37   : > { %v709_v61 = vpack.c.bf16 %v678_v59, %v677_v58  ;;  %v694_v62 = vld [vmem:[#allocation2 + $0xe0] sm:$0xff]  ;;  %v680_v0 = vld [vmem:[#allocation2 + $0x38] sm:$0xff]  ;;  %v1067_v6 = vld [vmem:[#allocation2 + $0x48] sm:$0xff]  ;;  %334 = vst.msk [vmem:[#allocation2 + $0x99] sm:$0xff] %vm186_vm0, %v1895_v25 }
  0x38   : > { %v717_v1 = vpack.c.bf16 %v694_v62, %v693_v60  ;;  %v2258_v2 = vpack.c.bf16 %v680_v0, %v679_v63  ;;  %501 = vrot.lane.b32.xlu1 %v2253_v53, %s2107_s17  ;;  %v566_v4 = vld [vmem:[#allocation2 + $0xda] sm:$0xff]  ;;  %v567_v5 = vld [vmem:[#allocation2 + $0xe2] sm:$0xff]  ;;  %v1068_v7 = vld [vmem:[#allocation2 + $0x50] sm:$0xff]  ;;  %349 = vst.msk [vmem:[#allocation2 + $0x151] sm:$0xff] %vm186_vm0, %v1926_v26 }
  0x39   : > { %404 = vst.msk [vmem:[#allocation3 + $0x8] sm:$0xff] %vm186_vm0, %v709_v61  ;;  %v2268_v8 = vpack.c.bf16 %v1068_v7, %v1067_v6  ;;  %v1083_v9 = vld [vmem:[#allocation2 + $0x108] sm:$0xff]  ;;  %v1084_v10 = vld [vmem:[#allocation2 + $0x110] sm:$0xff]  ;;  %v2271_v11 = vpack.c.bf16 %v567_v5, %v566_v4  ;;  %v696_v14 = vld [vmem:[#allocation2 + $0xf8] sm:$0xff] }
  0x3a   : > { %614 = vrot.lane.b32.xlu0 %v2256_v57, %s2108_s18  ;;  %412 = vst.msk [vmem:[#allocation3 + $0x48] sm:$0xff] %vm186_vm0, %v717_v1  ;;  %405 = vst.msk [vmem:[#allocation3 + $0x10] sm:$0xff] %vm186_vm0, %v2258_v2  ;;  %v2273_v12 = vpack.c.bf16 %v1084_v10, %v1083_v9  ;;  %v695_v13 = vld [vmem:[#allocation2 + $0xf0] sm:$0xff]  ;;  %v809_v16 = vld [vmem:[#allocation2 + $0x39] sm:$0xff] }
  0x3b   : > { %406 = vst.msk [vmem:[#allocation3 + $0x18] sm:$0xff] %vm186_vm0, %v2268_v8  ;;  %v808_v15 = vld [vmem:[#allocation2 + $0x31] sm:$0xff]  ;;  %v2285_v17 = vpack.c.bf16 %v696_v14, %v695_v13  ;;  %v371_v19 = vld [vmem:[#allocation2 + $0xc0] sm:$0xff]  ;;  %v372_v20 = vld [vmem:[#allocation2 + $0xc8] sm:$0xff] }
  0x3c   : > { %628 = vrot.lane.b32.xlu1 %v588_v3, %s2108_s18  ;;  %414 = vst.msk [vmem:[#allocation3 + $0x58] sm:$0xff] %vm186_vm0, %v2273_v12  ;;  %v2288_v18 = vpack.c.bf16 %v809_v16, %v808_v15  ;;  %v2290_v21 = vpack.c.bf16 %v372_v20, %v371_v19  ;;  %v824_v28 = vld [vmem:[#allocation2 + $0xf1] sm:$0xff]  ;;  %v825_v29 = vld [vmem:[#allocation2 + $0xf9] sm:$0xff]  ;;  %350 = vst.msk [vmem:[#allocation2 + $0x159] sm:$0xff] %vm186_vm0, %v1927_v27 }
  0x3d   : > { %v937_v30 = vld [vmem:[#allocation2 + $0x32] sm:$0xff]  ;;  %v938_v31 = vld [vmem:[#allocation2 + $0x3a] sm:$0xff]  ;;  %v2309_v33 = vpack.c.bf16 %v825_v29, %v824_v28  ;;  %v2074_v35 = vld [vmem:[%s2777_s1 + $0x8] sm:$0xff]   ;;  %335 = vst.msk [vmem:[#allocation2 + $0xa9] sm:$0xff] %vm186_vm0, %v1898_v42 }
  0x3e   : > { %741 = vrot.lane.b32.xlu0 %v709_v61, %s2109_s19  ;;  %411 = vst.msk [vmem:[#allocation3 + $0x40] sm:$0xff] %vm186_vm0, %v2290_v21  ;;  %v2313_v34 = vpack.c.bf16 %v938_v31, %v937_v30  ;;  %v953_v36 = vld [vmem:[#allocation2 + $0xf2] sm:$0xff]  ;;  %v954_v37 = vld [vmem:[#allocation2 + $0xfa] sm:$0xff]  ;;  %1977 = vmatprep.subr.bf16.mxu0 %v2074_v35  ;;  %336 = vst.msk [vmem:[#allocation2 + $0xb1] sm:$0xff] %vm186_vm0, %v1899_v43 }
  0x3f   : > { %v687_v39 = vld [vmem:[#allocation2 + $0x90] sm:$0xff]  ;;  %v688_v40 = vld [vmem:[#allocation2 + $0x98] sm:$0xff]  ;;  %1978 = vmatpush3.bf16.msra.mxu0 %v2074_v35  ;;  %2024 = vmatprep.subr.bf16.mxu1 %v2074_v35  ;;  %v2334_v48 = vpack.c.bf16 %v954_v37, %v953_v36  ;;  %v2077_v55 = vld [vmem:[%s2777_s1 + $0x20] sm:$0xff]  }
  0x40   : > { %630 = vrot.lane.b32.xlu1 %v2271_v11, %s2108_s18  ;;  %v703_v41 = vld [vmem:[#allocation2 + $0x150] sm:$0xff]  ;;  %v2323_v44 = vpack.c.bf16 %v688_v40, %v687_v39  ;;  %2032 = vmatpush3.bf16.msra.mxu1 %v2074_v35  ;;  %v2076_v52 = vld [vmem:[%s2777_s1 + $0x18] sm:$0xff]   ;;  %v2078_v60 = vld [vmem:[%s2777_s1 + $0x28] sm:$0xff]  }
  0x41   : > { %v1949_v49 = vld [vmem:[%s2214_s16 + $0x70] sm:$0xff]   ;;  %v2080_v10 = vld [vmem:[%s2777_s1 + $0x38] sm:$0xff]   ;;  %v683_v16 = vld [vmem:[#allocation2 + $0x60] sm:$0xff] }
  0x42   : > { %743 = vrot.lane.b32.xlu0 %v2258_v2, %s2109_s19  ;;  %409 = vst.msk [vmem:[#allocation3 + $0x30] sm:$0xff] %vm186_vm0, %v2323_v44  ;;  %v1930_v50 = vunpack.c.l.bf16 %v1949_v49  ;;  %v1931_v51 = vunpack.c.h.bf16 %v1949_v49  ;;  %v1197_v54 = vld [vmem:[#allocation2 + $0x51] sm:$0xff]  ;;  %v1212_v3 = vld [vmem:[#allocation2 + $0x109] sm:$0xff]  ;;  %v699_v23 = vld [vmem:[#allocation2 + $0x120] sm:$0xff] }
  0x43   : > { %v704_v45 = vld [vmem:[#allocation2 + $0x158] sm:$0xff]  ;;  %v375_v0 = vld [vmem:[#allocation2 + $0xf0] sm:$0xff]  ;;  %v700_v24 = vld [vmem:[#allocation2 + $0x128] sm:$0xff] }
  0x44   : > { %757 = vrot.lane.b32.xlu1 %v717_v1, %s2109_s19  ;;  %v2325_v46 = vpack.c.bf16 %v704_v45, %v703_v41  ;;  %351 = vst.msk [vmem:[#allocation2 + $0x169] sm:$0xff] %vm186_vm0, %v1930_v50  ;;  %352 = vst.msk [vmem:[#allocation2 + $0x171] sm:$0xff] %vm186_vm0, %v1931_v51  ;;  %v1075_v56 = vld [vmem:[#allocation2 + $0xa8] sm:$0xff]  ;;  %v376_v1 = vld [vmem:[#allocation2 + $0xf8] sm:$0xff]  ;;  %v720_v27 = vpack.c.bf16 %v700_v24, %v699_v23 }
  0x45   : > { %v1213_v4 = vld [vmem:[#allocation2 + $0x111] sm:$0xff]  ;;  %v812_v25 = vld [vmem:[#allocation2 + $0x61] sm:$0xff]  ;;  %v813_v26 = vld [vmem:[#allocation2 + $0x69] sm:$0xff] }
  0x46   : > { %870 = vrot.lane.b32.xlu0 %v452_v47, %s2110_s20  ;;  %v2075_v47 = vld [vmem:[%s2777_s1 + $0x10] sm:$0xff]   ;;  %417 = vst.msk [vmem:[#allocation3 + $0x70] sm:$0xff] %vm186_vm0, %v2325_v46  ;;  %v1235_v6 = vpack.c.bf16 %v1213_v4, %v1212_v3  ;;  %v828_v28 = vld [vmem:[#allocation2 + $0x121] sm:$0xff]  ;;  %v1071_v35 = vld [vmem:[#allocation2 + $0x78] sm:$0xff] }
  0x47   : > { %1979 = vmatprep.subr.bf16.mxu0 %v2075_v47  ;;  %2025 = vmatprep.subr.bf16.mxu1 %v2075_v47  ;;  %v2079_v5 = vld [vmem:[%s2777_s1 + $0x30] sm:$0xff]   ;;  %v941_v30 = vld [vmem:[#allocation2 + $0x62] sm:$0xff]  ;;  %v1087_v39 = vld [vmem:[#allocation2 + $0x138] sm:$0xff] }
  0x48   : > { %759 = vrot.lane.b32.xlu1 %v2285_v17, %s2109_s19  ;;  %1980 = vmatpush3.bf16.msra.mxu0 %v2075_v47  ;;  %v1325_v7 = vld [vmem:[#allocation2 + $0x4a] sm:$0xff]  ;;  %v1326_v9 = vld [vmem:[#allocation2 + $0x52] sm:$0xff]  ;;  %v1072_v36 = vld [vmem:[#allocation2 + $0x80] sm:$0xff] }
  0x49   : > { %2033 = vmatpush3.bf16.msra.mxu1 %v2075_v47  ;;  %1981 = vmatprep.subr.bf16.mxu0 %v2076_v52  ;;  %v1341_v13 = vld [vmem:[#allocation2 + $0x10a] sm:$0xff]  ;;  %v1342_v14 = vld [vmem:[#allocation2 + $0x112] sm:$0xff]  ;;  %v2434_v38 = vpack.c.bf16 %v1072_v36, %v1071_v35  ;;  %v1088_v40 = vld [vmem:[#allocation2 + $0x140] sm:$0xff] }
  0x4a   : > { %872 = vrot.lane.b32.xlu0 %v2288_v18, %s2110_s20  ;;  %2026 = vmatprep.subr.bf16.mxu1 %v2076_v52  ;;  %v1364_v15 = vpack.c.bf16 %v1342_v14, %v1341_v13  ;;  %v829_v29 = vld [vmem:[#allocation2 + $0x129] sm:$0xff]  ;;  %v1200_v41 = vld [vmem:[#allocation2 + $0x79] sm:$0xff]  ;;  %v1201_v42 = vld [vmem:[#allocation2 + $0x81] sm:$0xff]  ;;  %v2441_v43 = vpack.c.bf16 %v1088_v40, %v1087_v39 }
  0x4b   : > { %v1091_v61 = vld [vmem:[#allocation2 + $0x168] sm:$0xff]  ;;  %v1092_v62 = vld [vmem:[#allocation2 + $0x170] sm:$0xff]  ;;  %v2421_v32 = vpack.c.bf16 %v829_v29, %v828_v28  ;;  %v2445_v45 = vpack.c.bf16 %v1201_v42, %v1200_v41  ;;  %v379_v50 = vld [vmem:[#allocation2 + $0x120] sm:$0xff] }
  0x4c   : > { %886 = vrot.lane.b32.xlu1 %v2253_v53, %s2110_s20  ;;  %v1196_v53 = vld [vmem:[#allocation2 + $0x49] sm:$0xff]  ;;  %1982 = vmatpush3.bf16.msra.mxu0 %v2076_v52  ;;  %v2368_v63 = vpack.c.bf16 %v1092_v62, %v1091_v61  ;;  %v382_v4 = vld [vmem:[#allocation2 + $0x140] sm:$0xff]  ;;  %v961_v40 = vld [vmem:[#allocation2 + $0x152] sm:$0xff] }
  0x4d   : > { %2034 = vmatpush3.bf16.msra.mxu1 %v2076_v52  ;;  %1983 = vmatprep.subr.bf16.mxu0 %v2077_v55  ;;  %v2361_v59 = vpack.c.bf16 %v1197_v54, %v1196_v53  ;;  %v942_v31 = vld [vmem:[#allocation2 + $0x6a] sm:$0xff]  ;;  %v1216_v53 = vld [vmem:[#allocation2 + $0x139] sm:$0xff]  ;;  %v1217_v54 = vld [vmem:[#allocation2 + $0x141] sm:$0xff] }
  0x4e   : > { %999 = vrot.lane.b32.xlu0 %v2256_v57, %s2111_s23  ;;  %v1076_v57 = vld [vmem:[#allocation2 + $0xb0] sm:$0xff]  ;;  %2027 = vmatprep.subr.bf16.mxu1 %v2077_v55  ;;  %418 = vst.msk [vmem:[#allocation3 + $0x78] sm:$0xff] %vm186_vm0, %v2368_v63  ;;  %v364_v49 = vld [vmem:[#allocation2 + $0x68] sm:$0xff]  ;;  %v962_v41 = vld [vmem:[#allocation2 + $0x15a] sm:$0xff] }
  0x4f   : > { %v2355_v58 = vpack.c.bf16 %v1076_v57, %v1075_v56  ;;  %v380_v52 = vld [vmem:[#allocation2 + $0x128] sm:$0xff]  ;;  %v2457_v57 = vpack.c.bf16 %v1217_v54, %v1216_v53 }
  0x50   : > { %888 = vrot.lane.b32.xlu1 %v2309_v33, %s2110_s20  ;;  %1984 = vmatpush3.bf16.msra.mxu0 %v2077_v55  ;;  %v1330_v61 = vld [vmem:[#allocation2 + $0x82] sm:$0xff] }
  0x51   : > { %410 = vst.msk [vmem:[#allocation3 + $0x38] sm:$0xff] %vm186_vm0, %v2355_v58  ;;  %2035 = vmatpush3.bf16.msra.mxu1 %v2077_v55  ;;  %1985 = vmatprep.subr.bf16.mxu0 %v2078_v60  ;;  %v399_v55 = vpack.c.bf16 %v380_v52, %v379_v50  ;;  %v1204_v50 = vld [vmem:[#allocation2 + $0xa9] sm:$0xff] }
  0x52   : > { %1001 = vrot.lane.b32.xlu0 %v2313_v34, %s2111_s23  ;;  %2028 = vmatprep.subr.bf16.mxu1 %v2078_v60 }
  0x53   : > { %415 = vst.msk [vmem:[#allocation3 + $0x60] sm:$0xff] %vm186_vm0, %v399_v55 }
  0x54   : > { %1015 = vrot.lane.b32.xlu1 %v2271_v11, %s2111_s23  ;;  %1986 = vmatpush3.bf16.msra.mxu0 %v2078_v60  ;;  %v1356_v11 = vpack.c.bf16 %v1326_v9, %v1325_v7 }
  0x55   : > { %2036 = vmatpush3.bf16.msra.mxu1 %v2078_v60  ;;  %1987 = vmatprep.subr.bf16.mxu0 %v2079_v5  ;;  %v1329_v60 = vld [vmem:[#allocation2 + $0x7a] sm:$0xff] }
  0x56   : > { %1129 = vrot.lane.b32.xlu0 %v2258_v2, %s2112_s28  ;;  %v397_v2 = vpack.c.bf16 %v376_v1, %v375_v0  ;;  %2029 = vmatprep.subr.bf16.mxu1 %v2079_v5  ;;  %v365_v0 = vld [vmem:[#allocation2 + $0x78] sm:$0xff]  ;;  %v366_v1 = vld [vmem:[#allocation2 + $0x80] sm:$0xff] }
  0x57   : > { %v392_v3 = vpack.c.bf16 %v366_v1, %v365_v0  ;;  %v1333_v0 = vld [vmem:[#allocation2 + $0xaa] sm:$0xff]  ;;  %v1334_v1 = vld [vmem:[#allocation2 + $0xb2] sm:$0xff] }
  0x58   : > { %1017 = vrot.lane.b32.xlu1 %v2334_v48, %s2111_s23  ;;  %413 = vst.msk [vmem:[#allocation3 + $0x50] sm:$0xff] %vm186_vm0, %v397_v2  ;;  %1988 = vmatpush3.bf16.msra.mxu0 %v2079_v5  ;;  %v381_v2 = vld [vmem:[#allocation2 + $0x138] sm:$0xff] }
  0x59   : > { %2037 = vmatpush3.bf16.msra.mxu1 %v2079_v5  ;;  %1989 = vmatprep.subr.bf16.mxu0 %v2080_v10  ;;  %v2467_v5 = vpack.c.bf16 %v1330_v61, %v1329_v60  ;;  %408 = vst.msk [vmem:[#allocation3 + $0x28] sm:$0xff] %vm186_vm0, %v392_v3 }
  0x5a   : > { %1131 = vrot.lane.b32.xlu0 %v2268_v8, %s2112_s28  ;;  %2030 = vmatprep.subr.bf16.mxu1 %v2080_v10 }
  0x5c   : > { %1145 = vrot.lane.b32.xlu1 %v2285_v17, %s2112_s28  ;;  %1990 = vmatpush3.bf16.msra.mxu0 %v2080_v10  ;;  %v684_v17 = vld [vmem:[#allocation2 + $0x68] sm:$0xff] }
  0x5d   : > { %2038 = vmatpush3.bf16.msra.mxu1 %v2080_v10  ;;  %v712_v22 = vpack.c.bf16 %v684_v17, %v683_v16  ;;  %v1345_v10 = vld [vmem:[#allocation2 + $0x13a] sm:$0xff] }
  0x5e   : > { %1258 = vrot.lane.b32.xlu0 %v2288_v18, %s2113_s5 }
  0x60   : > { %1147 = vrot.lane.b32.xlu1 %v2273_v12, %s2112_s28 }
  0x62   : > { %1260 = vrot.lane.b32.xlu0 %v2361_v59, %s2113_s5 }
  0x64   : > { %1274 = vrot.lane.b32.xlu1 %v2309_v33, %s2113_s5 }
  0x66   : > { %1387 = vrot.lane.b32.xlu0 %v2313_v34, %s2114_s14 }
  0x68   : > { %1276 = vrot.lane.b32.xlu1 %v1235_v6, %s2113_s5 }
  0x6a   : > { %487 = vrot.lane.b32.xlu0 %v2288_v18, %s2107_s17  ;;  %v1950_v18 = vld [vmem:[%s2214_s16 + $0x78] sm:$0xff]   ;;  %s1871_s16 = sshll.u32 %s2784_s9, 8 }
  0x6b   : > { %v1934_v19 = vunpack.c.l.bf16 %v1950_v18  ;;  %v1935_v20 = vunpack.c.h.bf16 %v1950_v18 }
  0x6c   : > { %1403 = vrot.lane.b32.xlu1 %v2334_v48, %s2114_s14 }
  0x6d   : > { %353 = vst.msk [vmem:[#allocation2 + $0x181] sm:$0xff] %vm186_vm0, %v1934_v19  ;;  %354 = vst.msk [vmem:[#allocation2 + $0x189] sm:$0xff] %vm186_vm0, %v1935_v20 }
  0x6e   : > { %1389 = vrot.lane.b32.xlu0 %v1356_v11, %s2114_s14 }
  0x70   : > { %503 = vrot.lane.b32.xlu1 %v2309_v33, %s2107_s17  ;;  %v957_v33 = vld [vmem:[#allocation2 + $0x122] sm:$0xff] }
  0x72   : > { %489 = vrot.lane.b32.xlu0 %v2361_v59, %s2107_s17 }
  0x74   : > { %1405 = vrot.lane.b32.xlu1 %v1364_v15, %s2114_s14 }
  0x76   : > { %616 = vrot.lane.b32.xlu0 %v2313_v34, %s2108_s18  ;;  %v958_v34 = vld [vmem:[#allocation2 + $0x12a] sm:$0xff] }
  0x77   : > { %v2431_v37 = vpack.c.bf16 %v958_v34, %v957_v33  ;;  %v945_v33 = vld [vmem:[#allocation2 + $0x92] sm:$0xff]  ;;  %v946_v34 = vld [vmem:[#allocation2 + $0x9a] sm:$0xff] }
  0x78   : > { %505 = vrot.lane.b32.xlu1 %v1235_v6, %s2107_s17 }
  0x7a   : > { %618 = vrot.lane.b32.xlu0 %v1356_v11, %s2108_s18 }
  0x7c   : > { %632 = vrot.lane.b32.xlu1 %v2334_v48, %s2108_s18  ;;  %v363_v48 = vld [vmem:[#allocation2 + $0x60] sm:$0xff] }
  0x7d   : > { %v391_v51 = vpack.c.bf16 %v364_v49, %v363_v48 }
  0x7e   : > { %745 = vrot.lane.b32.xlu0 %v2268_v8, %s2109_s19  ;;  %v2415_v8 = vpack.c.bf16 %v813_v26, %v812_v25  ;;  %v816_v26 = vld [vmem:[#allocation2 + $0x91] sm:$0xff] }
  0x7f   : > { %407 = vst.msk [vmem:[#allocation3 + $0x20] sm:$0xff] %vm186_vm0, %v391_v51  ;;  %v1205_v51 = vld [vmem:[#allocation2 + $0xb1] sm:$0xff] }
  0x80   : > { %634 = vrot.lane.b32.xlu1 %v1364_v15, %s2108_s18 }
  0x82   : > { %747 = vrot.lane.b32.xlu0 %v712_v22, %s2109_s19 }
  0x84   : > { %761 = vrot.lane.b32.xlu1 %v2273_v12, %s2109_s19  ;;  %v2424_v12 = vpack.c.bf16 %v942_v31, %v941_v30  ;;  %v484_v47 = vpop.permute.xlu0 %483  ;;  %v832_v31 = vld [vmem:[#allocation2 + $0x151] sm:$0xff] }
  0x85   : > { %532 = vst.msk [vmem:[#allocation3] sm:$0xff] %vm531_vm2, %v484_v47 }
  0x86   : > { %874 = vrot.lane.b32.xlu0 %v2361_v59, %s2110_s20 }
  0x88   : > { %763 = vrot.lane.b32.xlu1 %v720_v27, %s2109_s19  ;;  %v613_v56 = vpop.permute.xlu0 %612 }
  0x89   : > { %661 = vst.msk [vmem:[#allocation3] sm:$0xff] %vm660_vm3, %v613_v56  ;;  %v1221_v56 = vld [vmem:[#allocation2 + $0x171] sm:$0xff] }
  0x8a   : > { %876 = vrot.lane.b32.xlu0 %v2415_v8, %s2110_s20 }
  0x8c   : > { %890 = vrot.lane.b32.xlu1 %v1235_v6, %s2110_s20  ;;  %v400_v6 = vpack.c.bf16 %v382_v4, %v381_v2  ;;  %v2581_v4 = vpack.c.bf16 %v1334_v1, %v1333_v0  ;;  %v1337_v1 = vld [vmem:[#allocation2 + $0xda] sm:$0xff] }
  0x8e   : > { %1003 = vrot.lane.b32.xlu0 %v1356_v11, %s2111_s23  ;;  %416 = vst.msk [vmem:[#allocation3 + $0x68] sm:$0xff] %vm186_vm0, %v400_v6  ;;  %v1346_v11 = vld [vmem:[#allocation2 + $0x142] sm:$0xff] }
  0x90   : > { %892 = vrot.lane.b32.xlu1 %v2421_v32, %s2110_s20 }
  0x92   : > { %1005 = vrot.lane.b32.xlu0 %v2424_v12, %s2111_s23 }
  0x94   : > { %1019 = vrot.lane.b32.xlu1 %v1364_v15, %s2111_s23  ;;  %v2481_v15 = vpack.c.bf16 %v1346_v11, %v1345_v10 }
  0x96   : > { %1133 = vrot.lane.b32.xlu0 %v712_v22, %s2112_s28 }
  0x98   : > { %1021 = vrot.lane.b32.xlu1 %v2431_v37, %s2111_s23 }
  0x9a   : > { %1135 = vrot.lane.b32.xlu0 %v2434_v38, %s2112_s28 }
  0x9c   : > { %1149 = vrot.lane.b32.xlu1 %v720_v27, %s2112_s28  ;;  %v817_v27 = vld [vmem:[#allocation2 + $0x99] sm:$0xff] }
  0x9d   : > { %v2515_v28 = vpack.c.bf16 %v817_v27, %v816_v26  ;;  %v820_v27 = vld [vmem:[#allocation2 + $0xc1] sm:$0xff] }
  0x9e   : > { %1262 = vrot.lane.b32.xlu0 %v2415_v8, %s2113_s5 }
  0xa0   : > { %1151 = vrot.lane.b32.xlu1 %v2441_v43, %s2112_s28 }
  0xa2   : > { %1264 = vrot.lane.b32.xlu0 %v2445_v45, %s2113_s5 }
  0xa4   : > { %1278 = vrot.lane.b32.xlu1 %v2421_v32, %s2113_s5 }
  0xa6   : > { %1391 = vrot.lane.b32.xlu0 %v2424_v12, %s2114_s14  ;;  %v486_v59 = vpop.permute.xlu1 %485 }
  0xa7   : > { %533 = vst.msk [vmem:[#allocation3 + $0x8] sm:$0xff] %vm531_vm2, %v486_v59 }
  0xa8   : > { %v500_v62 = vpop.permute.xlu0 %499  ;;  %1280 = vrot.lane.b32.xlu1 %v2457_v57, %s2113_s5 }
  0xa9   : > { %540 = vst.msk [vmem:[#allocation3 + $0x40] sm:$0xff] %vm531_vm2, %v500_v62 }
  0xaa   : > { %491 = vrot.lane.b32.xlu0 %v2415_v8, %s2107_s17  ;;  %v502_v7 = vpop.permute.xlu1 %501 }
  0xab   : > { %541 = vst.msk [vmem:[#allocation3 + $0x48] sm:$0xff] %vm531_vm2, %v502_v7  ;;  %v1349_v7 = vld [vmem:[#allocation2 + $0x16a] sm:$0xff] }
  0xac   : > { %v615_v9 = vpop.permute.xlu0 %614  ;;  %1407 = vrot.lane.b32.xlu1 %v2431_v37, %s2114_s14 }
  0xad   : > { %662 = vst.msk [vmem:[#allocation3 + $0x8] sm:$0xff] %vm660_vm3, %v615_v9  ;;  %v1350_v9 = vld [vmem:[#allocation2 + $0x172] sm:$0xff] }
  0xae   : > { %1393 = vrot.lane.b32.xlu0 %v2467_v5, %s2114_s14  ;;  %v629_v13 = vpop.permute.xlu1 %628 }
  0xaf   : > { %669 = vst.msk [vmem:[#allocation3 + $0x40] sm:$0xff] %vm660_vm3, %v629_v13 }
  0xb0   : > { %v742_v14 = vpop.permute.xlu0 %741  ;;  %507 = vrot.lane.b32.xlu1 %v2421_v32, %s2107_s17  ;;  %v833_v32 = vld [vmem:[#allocation2 + $0x159] sm:$0xff] }
  0xb1   : > { %790 = vst.msk [vmem:[#allocation3] sm:$0xff] %vm789_vm4, %v742_v14  ;;  %v2527_v36 = vpack.c.bf16 %v833_v32, %v832_v31  ;;  %v2593_v14 = vpack.c.bf16 %v1350_v9, %v1349_v7  ;;  %v836_v32 = vld [vmem:[#allocation2 + $0x181] sm:$0xff] }
  0xb2   : > { %493 = vrot.lane.b32.xlu0 %v2445_v45, %s2107_s17  ;;  %v631_v16 = vpop.permute.xlu1 %630 }
  0xb3   : > { %670 = vst.msk [vmem:[#allocation3 + $0x48] sm:$0xff] %vm660_vm3, %v631_v16 }
  0xb4   : > { %v744_v17 = vpop.permute.xlu0 %743  ;;  %1409 = vrot.lane.b32.xlu1 %v2481_v15, %s2114_s14 }
  0xb5   : > { %791 = vst.msk [vmem:[#allocation3 + $0x8] sm:$0xff] %vm789_vm4, %v744_v17 }
  0xb6   : > { %620 = vrot.lane.b32.xlu0 %v2424_v12, %s2108_s18  ;;  %v758_v18 = vpop.permute.xlu1 %757 }
  0xb7   : > { %798 = vst.msk [vmem:[#allocation3 + $0x40] sm:$0xff] %vm789_vm4, %v758_v18 }
  0xb8   : > { %v871_v19 = vpop.permute.xlu0 %870  ;;  %509 = vrot.lane.b32.xlu1 %v2457_v57, %s2107_s17 }
  0xb9   : > { %919 = vst.msk [vmem:[#allocation3] sm:$0xff] %vm918_vm5, %v871_v19 }
  0xba   : > { %622 = vrot.lane.b32.xlu0 %v2467_v5, %s2108_s18  ;;  %v760_v20 = vpop.permute.xlu1 %759 }
  0xbb   : > { %799 = vst.msk [vmem:[#allocation3 + $0x48] sm:$0xff] %vm789_vm4, %v760_v20 }
  0xbc   : > { %v873_v22 = vpop.permute.xlu0 %872  ;;  %636 = vrot.lane.b32.xlu1 %v2431_v37, %s2108_s18  ;;  %v2531_v37 = vpack.c.bf16 %v946_v34, %v945_v33  ;;  %v949_v33 = vld [vmem:[#allocation2 + $0xc2] sm:$0xff]  ;;  %v950_v34 = vld [vmem:[#allocation2 + $0xca] sm:$0xff] }
  0xbd   : > { %920 = vst.msk [vmem:[#allocation3 + $0x8] sm:$0xff] %vm918_vm5, %v873_v22 }
  0xbe   : > { %749 = vrot.lane.b32.xlu0 %v2434_v38, %s2109_s19  ;;  %v887_v23 = vpop.permute.xlu1 %886 }
  0xbf   : > { %927 = vst.msk [vmem:[#allocation3 + $0x40] sm:$0xff] %vm918_vm5, %v887_v23 }
  0xc0   : > { %v1000_v24 = vpop.permute.xlu0 %999  ;;  %638 = vrot.lane.b32.xlu1 %v2481_v15, %s2108_s18 }
  0xc1   : > { %1048 = vst.msk [vmem:[#allocation3] sm:$0xff] %vm1047_vm6, %v1000_v24  ;;  %v707_v24 = vld [vmem:[#allocation2 + $0x180] sm:$0xff] }
  0xc2   : > { %751 = vrot.lane.b32.xlu0 %v2323_v44, %s2109_s19  ;;  %v889_v25 = vpop.permute.xlu1 %888 }
  0xc3   : > { %928 = vst.msk [vmem:[#allocation3 + $0x48] sm:$0xff] %vm918_vm5, %v889_v25  ;;  %v708_v25 = vld [vmem:[#allocation2 + $0x188] sm:$0xff] }
  0xc4   : > { %v1002_v8 = vpop.permute.xlu0 %1001  ;;  %765 = vrot.lane.b32.xlu1 %v2441_v43, %s2109_s19 }
  0xc5   : > { %1049 = vst.msk [vmem:[#allocation3 + $0x8] sm:$0xff] %vm1047_vm6, %v1002_v8  ;;  %v821_v8 = vld [vmem:[#allocation2 + $0xc9] sm:$0xff] }
  0xc6   : > { %878 = vrot.lane.b32.xlu0 %v2445_v45, %s2110_s20  ;;  %v1016_v29 = vpop.permute.xlu1 %1015  ;;  %v2543_v45 = vpack.c.bf16 %v962_v41, %v961_v40  ;;  %v965_v40 = vld [vmem:[#allocation2 + $0x182] sm:$0xff]  ;;  %v966_v41 = vld [vmem:[#allocation2 + $0x18a] sm:$0xff] }
  0xc7   : > { %1056 = vst.msk [vmem:[#allocation3 + $0x40] sm:$0xff] %vm1047_vm6, %v1016_v29  ;;  %v845_v29 = vpack.c.bf16 %v821_v8, %v820_v27 }
  0xc8   : > { %v1130_v30 = vpop.permute.xlu0 %1129  ;;  %767 = vrot.lane.b32.xlu1 %v2325_v46, %s2109_s19 }
  0xc9   : > { %1178 = vst.msk [vmem:[#allocation3] sm:$0xff] %vm1177_vm7, %v1130_v30 }
  0xca   : > { %880 = vrot.lane.b32.xlu0 %v2515_v28, %s2110_s20  ;;  %v1018_v12 = vpop.permute.xlu1 %1017 }
  0xcb   : > { %1057 = vst.msk [vmem:[#allocation3 + $0x48] sm:$0xff] %vm1047_vm6, %v1018_v12  ;;  %v837_v12 = vld [vmem:[#allocation2 + $0x189] sm:$0xff] }
  0xcc   : > { %v1132_v35 = vpop.permute.xlu0 %1131  ;;  %894 = vrot.lane.b32.xlu1 %v2457_v57, %s2110_s20 }
  0xcd   : > { %1179 = vst.msk [vmem:[#allocation3 + $0x8] sm:$0xff] %vm1177_vm7, %v1132_v35 }
  0xce   : > { %1007 = vrot.lane.b32.xlu0 %v2467_v5, %s2111_s23  ;;  %v1146_v38 = vpop.permute.xlu1 %1145 }
  0xcf   : > { %1186 = vst.msk [vmem:[#allocation3 + $0x40] sm:$0xff] %vm1177_vm7, %v1146_v38 }
  0xd0   : > { %v1259_v39 = vpop.permute.xlu0 %1258  ;;  %896 = vrot.lane.b32.xlu1 %v2527_v36, %s2110_s20 }
  0xd1   : > { %1307 = vst.msk [vmem:[#allocation3] sm:$0xff] %vm1306_vm8, %v1259_v39 }
  0xd2   : > { %1009 = vrot.lane.b32.xlu0 %v2531_v37, %s2111_s23  ;;  %v1148_v42 = vpop.permute.xlu1 %1147 }
  0xd3   : > { %1187 = vst.msk [vmem:[#allocation3 + $0x48] sm:$0xff] %vm1177_vm7, %v1148_v42 }
  0xd4   : > { %v1261_v43 = vpop.permute.xlu0 %1260  ;;  %1023 = vrot.lane.b32.xlu1 %v2481_v15, %s2111_s23 }
  0xd5   : > { %1308 = vst.msk [vmem:[#allocation3 + $0x8] sm:$0xff] %vm1306_vm8, %v1261_v43  ;;  %v1079_v43 = vld [vmem:[#allocation2 + $0xd8] sm:$0xff] }
  0xd6   : > { %1137 = vrot.lane.b32.xlu0 %v2323_v44, %s2112_s28  ;;  %v1275_v47 = vpop.permute.xlu1 %1274  ;;  %v2559_v44 = vpack.c.bf16 %v1205_v51, %v1204_v50 }
  0xd7   : > { %1315 = vst.msk [vmem:[#allocation3 + $0x40] sm:$0xff] %vm1306_vm8, %v1275_v47 }
  0xd8   : > { %v1388_v48 = vpop.permute.xlu0 %1387  ;;  %1025 = vrot.lane.b32.xlu1 %v2543_v45, %s2111_s23 }
  0xd9   : > { %1436 = vst.msk [vmem:[#allocation3] sm:$0xff] %vm1435_vm9, %v1388_v48  ;;  %v982_v48 = vpack.c.bf16 %v966_v41, %v965_v40 }
  0xda   : > { %1139 = vrot.lane.b32.xlu0 %v2355_v58, %s2112_s28  ;;  %v1277_v49 = vpop.permute.xlu1 %1276 }
  0xdb   : > { %1316 = vst.msk [vmem:[#allocation3 + $0x48] sm:$0xff] %vm1306_vm8, %v1277_v49 }
  0xdc   : > { %v488_v52 = vpop.permute.xlu0 %487  ;;  %1153 = vrot.lane.b32.xlu1 %v2325_v46, %s2112_s28  ;;  %v1220_v46 = vld [vmem:[#allocation2 + $0x169] sm:$0xff] }
  0xdd   : > { %534 = vst.msk [vmem:[#allocation3 + $0x10] sm:$0xff] %vm531_vm2, %v488_v52  ;;  %v2571_v60 = vpack.c.bf16 %v1221_v56, %v1220_v46  ;;  %v1095_v52 = vld [vmem:[#allocation2 + $0x198] sm:$0xff] }
  0xde   : > { %1266 = vrot.lane.b32.xlu0 %v2515_v28, %s2113_s5  ;;  %v1404_v53 = vpop.permute.xlu1 %1403 }
  0xdf   : > { %1444 = vst.msk [vmem:[#allocation3 + $0x40] sm:$0xff] %vm1435_vm9, %v1404_v53 }
  0xe0   : > { %v1390_v54 = vpop.permute.xlu0 %1389  ;;  %v1452_v55 = vld [vmem:[#allocation3] sm:$0xff]  ;;  %1155 = vrot.lane.b32.xlu1 %v2368_v63, %s2112_s28 }
  0xe1   : > { %1437 = vst.msk [vmem:[#allocation3 + $0x8] sm:$0xff] %vm1435_vm9, %v1390_v54  ;;  %1991 = vmatprep.mubr.bf16.mxu0 %v1452_v55  ;;  %v1208_v54 = vld [vmem:[#allocation2 + $0xd9] sm:$0xff]  ;;  %v1209_v55 = vld [vmem:[#allocation2 + $0xe1] sm:$0xff] }
  0xe2   : > { %1268 = vrot.lane.b32.xlu0 %v2559_v44, %s2113_s5  ;;  %v504_v57 = vpop.permute.xlu1 %503  ;;  %v1233_v56 = vpack.c.bf16 %v1209_v55, %v1208_v54 }
  0xe3   : > { %542 = vst.msk [vmem:[#allocation3 + $0x50] sm:$0xff] %vm531_vm2, %v504_v57 }
  0xe4   : > { %v490_v59 = vpop.permute.xlu0 %489  ;;  %1282 = vrot.lane.b32.xlu1 %v2527_v36, %s2113_s5 }
  0xe5   : > { %535 = vst.msk [vmem:[#allocation3 + $0x18] sm:$0xff] %vm531_vm2, %v490_v59 }
  0xe6   : > { %1395 = vrot.lane.b32.xlu0 %v2531_v37, %s2114_s14  ;;  %v1406_v61 = vpop.permute.xlu1 %1405  ;;  %v1460_v62 = vld [vmem:[#allocation3 + $0x40] sm:$0xff] }
  0xe7   : > { %1445 = vst.msk [vmem:[#allocation3 + $0x48] sm:$0xff] %vm1435_vm9, %v1406_v61  ;;  %2007 = vmatprep.mubr.bf16.mxu1 %v1460_v62  ;;  %v1224_v61 = vld [vmem:[#allocation2 + $0x199] sm:$0xff]  ;;  %v1225_v62 = vld [vmem:[#allocation2 + $0x1a1] sm:$0xff] }
  0xe8   : > { %v617_v2 = vpop.permute.xlu0 %616  ;;  %v1453_v3 = vld [vmem:[#allocation3 + $0x8] sm:$0xff]  ;;  %1284 = vrot.lane.b32.xlu1 %v2571_v60, %s2113_s5 }
  0xe9   : > { %663 = vst.msk [vmem:[#allocation3 + $0x10] sm:$0xff] %vm660_vm3, %v617_v2  ;;  %1992 = vmatmul.mubr.bf16.vlgmr.msra.gmra.mrb[0].mxu0 %v1453_v3  ;;  %v1338_v2 = vld [vmem:[#allocation2 + $0xe2] sm:$0xff] }
  0xea   : > { %495 = vrot.lane.b32.xlu0 %v2515_v28, %s2107_s17  ;;  %v506_v5 = vpop.permute.xlu1 %505  ;;  %v724_v28 = vpack.c.bf16 %v708_v25, %v707_v24 }
  0xeb   : > { %543 = vst.msk [vmem:[#allocation3 + $0x58] sm:$0xff] %vm531_vm2, %v506_v5  ;;  %v1362_v5 = vpack.c.bf16 %v1338_v2, %v1337_v1 }
  0xec   : > { %v619_v6 = vpop.permute.xlu0 %618  ;;  %1411 = vrot.lane.b32.xlu1 %v2543_v45, %s2114_s14 }
  0xed   : > { %664 = vst.msk [vmem:[#allocation3 + $0x18] sm:$0xff] %vm660_vm3, %v619_v6 }
  0xee   : > { %1397 = vrot.lane.b32.xlu0 %v2581_v4, %s2114_s14  ;;  %v633_v10 = vpop.permute.xlu1 %632  ;;  %v1461_v11 = vld [vmem:[#allocation3 + $0x48] sm:$0xff] }
  0xef   : > { %671 = vst.msk [vmem:[#allocation3 + $0x50] sm:$0xff] %vm660_vm3, %v633_v10  ;;  %2008 = vmatmul.mubr.bf16.vlgmr.msra.gmra.mrb[0].mxu1 %v1461_v11  ;;  %v1353_v11 = vld [vmem:[#allocation2 + $0x19a] sm:$0xff] }
  0xf0   : > { %v746_v13 = vpop.permute.xlu0 %745  ;;  %511 = vrot.lane.b32.xlu1 %v2527_v36, %s2107_s17  ;;  %v853_v36 = vpack.c.bf16 %v837_v12, %v836_v32 }
  0xf1   : > { %792 = vst.msk [vmem:[#allocation3 + $0x10] sm:$0xff] %vm789_vm4, %v746_v13  ;;  %v1354_v13 = vld [vmem:[#allocation2 + $0x1a2] sm:$0xff] }
  0xf2   : > { %497 = vrot.lane.b32.xlu0 %v2559_v44, %s2107_s17  ;;  %v635_v15 = vpop.permute.xlu1 %634 }
  0xf3   : > { %672 = vst.msk [vmem:[#allocation3 + $0x58] sm:$0xff] %vm660_vm3, %v635_v15 }
  0xf4   : > { %v748_v16 = vpop.permute.xlu0 %747  ;;  %1413 = vrot.lane.b32.xlu1 %v2593_v14, %s2114_s14 }
  0xf5   : > { %793 = vst.msk [vmem:[#allocation3 + $0x18] sm:$0xff] %vm789_vm4, %v748_v16  ;;  %v1370_v16 = vpack.c.bf16 %v1354_v13, %v1353_v11 }
  0xf6   : > { %624 = vrot.lane.b32.xlu0 %v2531_v37, %s2108_s18  ;;  %v762_v17 = vpop.permute.xlu1 %761  ;;  %v974_v37 = vpack.c.bf16 %v950_v34, %v949_v33 }
  0xf7   : > { %800 = vst.msk [vmem:[#allocation3 + $0x50] sm:$0xff] %vm789_vm4, %v762_v17 }
  0xf8   : > { %v875_v18 = vpop.permute.xlu0 %874  ;;  %513 = vrot.lane.b32.xlu1 %v2571_v60, %s2107_s17 }
  0xf9   : > { %921 = vst.msk [vmem:[#allocation3 + $0x10] sm:$0xff] %vm918_vm5, %v875_v18 }
  0xfa   : > { %626 = vrot.lane.b32.xlu0 %v2581_v4, %s2108_s18  ;;  %v764_v19 = vpop.permute.xlu1 %763 }
  0xfb   : > { %801 = vst.msk [vmem:[#allocation3 + $0x58] sm:$0xff] %vm789_vm4, %v764_v19 }
  0xfc   : > { %v877_v20 = vpop.permute.xlu0 %876  ;;  %640 = vrot.lane.b32.xlu1 %v2543_v45, %s2108_s18  ;;  %v1080_v45 = vld [vmem:[#allocation2 + $0xe0] sm:$0xff] }
  0xfd   : > { %922 = vst.msk [vmem:[#allocation3 + $0x18] sm:$0xff] %vm918_vm5, %v877_v20  ;;  %v1104_v49 = vpack.c.bf16 %v1080_v45, %v1079_v43 }
  0xfe   : > { %753 = vrot.lane.b32.xlu0 %v2355_v58, %s2109_s19  ;;  %v891_v22 = vpop.permute.xlu1 %890 }
  0xff   : > { %929 = vst.msk [vmem:[#allocation3 + $0x50] sm:$0xff] %vm918_vm5, %v891_v22 }
 0x100   : > { %v1004_v23 = vpop.permute.xlu0 %1003  ;;  %642 = vrot.lane.b32.xlu1 %v2593_v14, %s2108_s18 }
 0x101   : > { %1050 = vst.msk [vmem:[#allocation3 + $0x10] sm:$0xff] %vm1047_vm6, %v1004_v23 }
 0x102   : > { %755 = vrot.lane.b32.xlu0 %v2290_v21, %s2109_s19  ;;  %v893_v26 = vpop.permute.xlu1 %892 }
 0x103   : > { %930 = vst.msk [vmem:[#allocation3 + $0x58] sm:$0xff] %vm918_vm5, %v893_v26 }
 0x104   : > { %v1006_v58 = vpop.permute.xlu0 %1005  ;;  %769 = vrot.lane.b32.xlu1 %v2368_v63, %s2109_s19 }
 0x105   : > { %1051 = vst.msk [vmem:[#allocation3 + $0x18] sm:$0xff] %vm1047_vm6, %v1006_v58 }
 0x106   : > { %882 = vrot.lane.b32.xlu0 %v2559_v44, %s2110_s20  ;;  %v1020_v30 = vpop.permute.xlu1 %1019  ;;  %v1096_v44 = vld [vmem:[#allocation2 + $0x1a0] sm:$0xff] }
 0x107   : > { %1058 = vst.msk [vmem:[#allocation3 + $0x50] sm:$0xff] %vm1047_vm6, %v1020_v30 }
 0x108   : > { %v1134_v31 = vpop.permute.xlu0 %1133  ;;  %771 = vrot.lane.b32.xlu1 %v724_v28, %s2109_s19  ;;  %s2733_s19 = scalar_lea.vmem %s2778_s2, %s1871_s16 }
 0x109   : > { %1180 = vst.msk [vmem:[#allocation3 + $0x10] sm:$0xff] %vm1177_vm7, %v1134_v31 }
 0x10a   : > { %884 = vrot.lane.b32.xlu0 %v845_v29, %s2110_s20  ;;  %v1022_v63 = vpop.permute.xlu1 %1021 }
 0x10b   : > { %1059 = vst.msk [vmem:[#allocation3 + $0x58] sm:$0xff] %vm1047_vm6, %v1022_v63 }
 0x10c   : > { %v1136_v35 = vpop.permute.xlu0 %1135  ;;  %898 = vrot.lane.b32.xlu1 %v2571_v60, %s2110_s20 }
 0x10d   : > { %1181 = vst.msk [vmem:[#allocation3 + $0x18] sm:$0xff] %vm1177_vm7, %v1136_v35 }
 0x10e   : > { %1011 = vrot.lane.b32.xlu0 %v2581_v4, %s2111_s23  ;;  %v1150_v38 = vpop.permute.xlu1 %1149  ;;  %v1241_v4 = vpack.c.bf16 %v1225_v62, %v1224_v61 }
 0x10f   : > { %1188 = vst.msk [vmem:[#allocation3 + $0x50] sm:$0xff] %vm1177_vm7, %v1150_v38 }
 0x110   : > { %v1263_v39 = vpop.permute.xlu0 %1262  ;;  %900 = vrot.lane.b32.xlu1 %v853_v36, %s2110_s20 }
 0x111   : > { %1309 = vst.msk [vmem:[#allocation3 + $0x10] sm:$0xff] %vm1306_vm8, %v1263_v39 }
 0x112   : > { %1013 = vrot.lane.b32.xlu0 %v974_v37, %s2111_s23  ;;  %v1152_v42 = vpop.permute.xlu1 %1151 }
 0x113   : > { %1189 = vst.msk [vmem:[#allocation3 + $0x58] sm:$0xff] %vm1177_vm7, %v1152_v42 }
 0x114   : > { %v1265_v47 = vpop.permute.xlu0 %1264  ;;  %1027 = vrot.lane.b32.xlu1 %v2593_v14, %s2111_s23 }
 0x115   : > { %1310 = vst.msk [vmem:[#allocation3 + $0x18] sm:$0xff] %vm1306_vm8, %v1265_v47 }
 0x116   : > { %1141 = vrot.lane.b32.xlu0 %v2290_v21, %s2112_s28  ;;  %v1279_v50 = vpop.permute.xlu1 %1278  ;;  %v1112_v21 = vpack.c.bf16 %v1096_v44, %v1095_v52 }
 0x117   : > { %1317 = vst.msk [vmem:[#allocation3 + $0x50] sm:$0xff] %vm1306_vm8, %v1279_v50 }
 0x118   : > { %v1392_v51 = vpop.permute.xlu0 %1391  ;;  %1029 = vrot.lane.b32.xlu1 %v982_v48, %s2111_s23 }
 0x119   : > { %1438 = vst.msk [vmem:[#allocation3 + $0x10] sm:$0xff] %vm1435_vm9, %v1392_v51 }
 0x11a   : > { %1143 = vrot.lane.b32.xlu0 %v1104_v49, %s2112_s28  ;;  %v1281_v53 = vpop.permute.xlu1 %1280 }
 0x11b   : > { %1318 = vst.msk [vmem:[#allocation3 + $0x58] sm:$0xff] %vm1306_vm8, %v1281_v53 }
 0x11c   : > { %v492_v46 = vpop.permute.xlu0 %491  ;;  %1157 = vrot.lane.b32.xlu1 %v724_v28, %s2112_s28 }
 0x11d   : > { %536 = vst.msk [vmem:[#allocation3 + $0x20] sm:$0xff] %vm531_vm2, %v492_v46 }
 0x11e   : > { %1270 = vrot.lane.b32.xlu0 %v845_v29, %s2113_s5  ;;  %v1408_v57 = vpop.permute.xlu1 %1407 }
 0x11f   : > { %1446 = vst.msk [vmem:[#allocation3 + $0x50] sm:$0xff] %vm1435_vm9, %v1408_v57 }
 0x120   : > { %v1394_v59 = vpop.permute.xlu0 %1393  ;;  %v1454_v60 = vld [vmem:[#allocation3 + $0x10] sm:$0xff]  ;;  %1159 = vrot.lane.b32.xlu1 %v1112_v21, %s2112_s28 }
 0x121   : > { %1439 = vst.msk [vmem:[#allocation3 + $0x18] sm:$0xff] %vm1435_vm9, %v1394_v59  ;;  %1995 = vmatprep.mubr.bf16.mxu0 %v1454_v60 }
 0x122   : > { %1272 = vrot.lane.b32.xlu0 %v1233_v56, %s2113_s5  ;;  %v508_v0 = vpop.permute.xlu1 %507 }
 0x123   : > { %544 = vst.msk [vmem:[#allocation3 + $0x60] sm:$0xff] %vm531_vm2, %v508_v0 }
 0x124   : > { %v494_v3 = vpop.permute.xlu0 %493  ;;  %1286 = vrot.lane.b32.xlu1 %v853_v36, %s2113_s5 }
 0x125   : > { %537 = vst.msk [vmem:[#allocation3 + $0x28] sm:$0xff] %vm531_vm2, %v494_v3 }
 0x126   : > { %1399 = vrot.lane.b32.xlu0 %v974_v37, %s2114_s14  ;;  %v1410_v6 = vpop.permute.xlu1 %1409  ;;  %v1462_v7 = vld [vmem:[#allocation3 + $0x50] sm:$0xff] }
 0x127   : > { %1447 = vst.msk [vmem:[#allocation3 + $0x58] sm:$0xff] %vm1435_vm9, %v1410_v6  ;;  %2011 = vmatprep.mubr.bf16.mxu1 %v1462_v7 }
 0x128   : > { %v621_v9 = vpop.permute.xlu0 %620  ;;  %v1455_v10 = vld [vmem:[#allocation3 + $0x18] sm:$0xff]  ;;  %1288 = vrot.lane.b32.xlu1 %v1241_v4, %s2113_s5 }
 0x129   : > { %665 = vst.msk [vmem:[#allocation3 + $0x20] sm:$0xff] %vm660_vm3, %v621_v9  ;;  %1996 = vmatmul.mubr.bf16.gmra.mrb[4].mxu0 %v1455_v10 }
 0x12a   : > { %1401 = vrot.lane.b32.xlu0 %v1362_v5, %s2114_s14  ;;  %v510_v14 = vpop.permute.xlu1 %509 }
 0x12b   : > { %545 = vst.msk [vmem:[#allocation3 + $0x68] sm:$0xff] %vm531_vm2, %v510_v14 }
 0x12c   : > { %v623_v15 = vpop.permute.xlu0 %622  ;;  %1415 = vrot.lane.b32.xlu1 %v982_v48, %s2114_s14 }
 0x12d   : > { %666 = vst.msk [vmem:[#allocation3 + $0x28] sm:$0xff] %vm660_vm3, %v623_v15 }
 0x12e   : > { %v637_v17 = vpop.permute.xlu1 %636  ;;  %v1463_v18 = vld [vmem:[#allocation3 + $0x58] sm:$0xff] }
 0x12f   : > { %673 = vst.msk [vmem:[#allocation3 + $0x60] sm:$0xff] %vm660_vm3, %v637_v17  ;;  %2012 = vmatmul.mubr.bf16.gmra.mrb[4].mxu1 %v1463_v18 }
 0x130   : > { %v750_v19 = vpop.permute.xlu0 %749  ;;  %1417 = vrot.lane.b32.xlu1 %v1370_v16, %s2114_s14 }
 0x131   : > { %794 = vst.msk [vmem:[#allocation3 + $0x20] sm:$0xff] %vm789_vm4, %v750_v19 }
 0x132   : > { %v639_v20 = vpop.permute.xlu1 %638 }
 0x133   : > { %674 = vst.msk [vmem:[#allocation3 + $0x68] sm:$0xff] %vm660_vm3, %v639_v20 }
 0x134   : > { %v752_v22 = vpop.permute.xlu0 %751 }
 0x135   : > { %795 = vst.msk [vmem:[#allocation3 + $0x28] sm:$0xff] %vm789_vm4, %v752_v22 }
 0x136   : > { %v766_v23 = vpop.permute.xlu1 %765 }
 0x137   : > { %802 = vst.msk [vmem:[#allocation3 + $0x60] sm:$0xff] %vm789_vm4, %v766_v23 }
 0x138   : > { %v879_v24 = vpop.permute.xlu0 %878 }
 0x139   : > { %923 = vst.msk [vmem:[#allocation3 + $0x20] sm:$0xff] %vm918_vm5, %v879_v24 }
 0x13a   : > { %v768_v25 = vpop.permute.xlu1 %767 }
 0x13b   : > { %803 = vst.msk [vmem:[#allocation3 + $0x68] sm:$0xff] %vm789_vm4, %v768_v25 }
 0x13c   : > { %v881_v26 = vpop.permute.xlu0 %880 }
 0x13d   : > { %924 = vst.msk [vmem:[#allocation3 + $0x28] sm:$0xff] %vm918_vm5, %v881_v26 }
 0x13e   : > { %v895_v27 = vpop.permute.xlu1 %894 }
 0x13f   : > { %931 = vst.msk [vmem:[#allocation3 + $0x60] sm:$0xff] %vm918_vm5, %v895_v27 }
 0x140   : > { %v1008_v8 = vpop.permute.xlu0 %1007 }
 0x141   : > { %1052 = vst.msk [vmem:[#allocation3 + $0x20] sm:$0xff] %vm1047_vm6, %v1008_v8 }
 0x142   : > { %v897_v58 = vpop.permute.xlu1 %896 }
 0x143   : > { %932 = vst.msk [vmem:[#allocation3 + $0x68] sm:$0xff] %vm918_vm5, %v897_v58 }
 0x144   : > { %v1010_v28 = vpop.permute.xlu0 %1009 }
 0x145   : > { %1053 = vst.msk [vmem:[#allocation3 + $0x28] sm:$0xff] %vm1047_vm6, %v1010_v28 }
 0x146   : > { %v1024_v29 = vpop.permute.xlu1 %1023 }
 0x147   : > { %1060 = vst.msk [vmem:[#allocation3 + $0x60] sm:$0xff] %vm1047_vm6, %v1024_v29 }
 0x148   : > { %v1138_v30 = vpop.permute.xlu0 %1137 }
 0x149   : > { %1182 = vst.msk [vmem:[#allocation3 + $0x20] sm:$0xff] %vm1177_vm7, %v1138_v30 }
 0x14a   : > { %v1026_v31 = vpop.permute.xlu1 %1025 }
 0x14b   : > { %1061 = vst.msk [vmem:[#allocation3 + $0x68] sm:$0xff] %vm1047_vm6, %v1026_v31 }
 0x14c   : > { %v1140_v32 = vpop.permute.xlu0 %1139 }
 0x14d   : > { %1183 = vst.msk [vmem:[#allocation3 + $0x28] sm:$0xff] %vm1177_vm7, %v1140_v32 }
 0x14e   : > { %v1154_v12 = vpop.permute.xlu1 %1153 }
 0x14f   : > { %1190 = vst.msk [vmem:[#allocation3 + $0x60] sm:$0xff] %vm1177_vm7, %v1154_v12 }
 0x150   : > { %v1267_v63 = vpop.permute.xlu0 %1266 }
 0x151   : > { %1311 = vst.msk [vmem:[#allocation3 + $0x20] sm:$0xff] %vm1306_vm8, %v1267_v63 }
 0x152   : > { %v1156_v33 = vpop.permute.xlu1 %1155 }
 0x153   : > { %1191 = vst.msk [vmem:[#allocation3 + $0x68] sm:$0xff] %vm1177_vm7, %v1156_v33 }
 0x154   : > { %v1269_v34 = vpop.permute.xlu0 %1268 }
 0x155   : > { %1312 = vst.msk [vmem:[#allocation3 + $0x28] sm:$0xff] %vm1306_vm8, %v1269_v34 }
 0x156   : > { %v1283_v35 = vpop.permute.xlu1 %1282 }
 0x157   : > { %1319 = vst.msk [vmem:[#allocation3 + $0x60] sm:$0xff] %vm1306_vm8, %v1283_v35 }
 0x158   : > { %v1396_v36 = vpop.permute.xlu0 %1395 }
 0x159   : > { %1440 = vst.msk [vmem:[#allocation3 + $0x20] sm:$0xff] %vm1435_vm9, %v1396_v36 }
 0x15a   : > { %v1285_v37 = vpop.permute.xlu1 %1284 }
 0x15b   : > { %1320 = vst.msk [vmem:[#allocation3 + $0x68] sm:$0xff] %vm1306_vm8, %v1285_v37 }
 0x15c   : > { %v496_v38 = vpop.permute.xlu0 %495 }
 0x15d   : > { %538 = vst.msk [vmem:[#allocation3 + $0x30] sm:$0xff] %vm531_vm2, %v496_v38 }
 0x15e   : > { %v1412_v39 = vpop.permute.xlu1 %1411 }
 0x15f   : > { %1448 = vst.msk [vmem:[#allocation3 + $0x60] sm:$0xff] %vm1435_vm9, %v1412_v39 }
 0x160   : > { %v1398_v40 = vpop.permute.xlu0 %1397  ;;  %v1456_v41 = vld [vmem:[#allocation3 + $0x20] sm:$0xff] }
 0x161   : > { %1441 = vst.msk [vmem:[#allocation3 + $0x28] sm:$0xff] %vm1435_vm9, %v1398_v40  ;;  %1999 = vmatprep.mubr.bf16.mxu0 %v1456_v41 }
 0x162   : > { %v512_v42 = vpop.permute.xlu1 %511 }
 0x163   : > { %546 = vst.msk [vmem:[#allocation3 + $0x70] sm:$0xff] %vm531_vm2, %v512_v42 }
 0x164   : > { %v498_v43 = vpop.permute.xlu0 %497 }
 0x165   : > { %539 = vst.msk [vmem:[#allocation3 + $0x38] sm:$0xff] %vm531_vm2, %v498_v43 }
 0x166   : > { %v1414_v45 = vpop.permute.xlu1 %1413  ;;  %v1464_v47 = vld [vmem:[#allocation3 + $0x60] sm:$0xff] }
 0x167   : > { %1449 = vst.msk [vmem:[#allocation3 + $0x68] sm:$0xff] %vm1435_vm9, %v1414_v45  ;;  %2015 = vmatprep.mubr.bf16.mxu1 %v1464_v47 }
 0x168   : > { %v625_v48 = vpop.permute.xlu0 %624  ;;  %v1457_v49 = vld [vmem:[#allocation3 + $0x28] sm:$0xff] }
 0x169   : > { %667 = vst.msk [vmem:[#allocation3 + $0x30] sm:$0xff] %vm660_vm3, %v625_v48  ;;  %2000 = vmatmul.mubr.bf16.gmra.mrb[8].mxu0 %v1457_v49 }
 0x16a   : > { %v514_v50 = vpop.permute.xlu1 %513 }
 0x16b   : > { %547 = vst.msk [vmem:[#allocation3 + $0x78] sm:$0xff] %vm531_vm2, %v514_v50 }
 0x16c   : > { %v627_v51 = vpop.permute.xlu0 %626 }
 0x16d   : > { %668 = vst.msk [vmem:[#allocation3 + $0x38] sm:$0xff] %vm660_vm3, %v627_v51 }
 0x16e   : > { %v641_v52 = vpop.permute.xlu1 %640  ;;  %v1465_v44 = vld [vmem:[#allocation3 + $0x68] sm:$0xff] }
 0x16f   : > { %675 = vst.msk [vmem:[#allocation3 + $0x70] sm:$0xff] %vm660_vm3, %v641_v52  ;;  %2016 = vmatmul.mubr.bf16.gmra.mrb[8].mxu1 %v1465_v44 }
 0x170   : > { %v754_v53 = vpop.permute.xlu0 %753 }
 0x171   : > { %796 = vst.msk [vmem:[#allocation3 + $0x30] sm:$0xff] %vm789_vm4, %v754_v53 }
 0x172   : > { %v643_v54 = vpop.permute.xlu1 %642 }
 0x173   : > { %676 = vst.msk [vmem:[#allocation3 + $0x78] sm:$0xff] %vm660_vm3, %v643_v54 }
 0x174   : > { %v756_v55 = vpop.permute.xlu0 %755 }
 0x175   : > { %797 = vst.msk [vmem:[#allocation3 + $0x38] sm:$0xff] %vm789_vm4, %v756_v55 }
 0x176   : > { %v770_v46 = vpop.permute.xlu1 %769 }
 0x177   : > { %804 = vst.msk [vmem:[#allocation3 + $0x70] sm:$0xff] %vm789_vm4, %v770_v46 }
 0x178   : > { %v883_v21 = vpop.permute.xlu0 %882 }
 0x179   : > { %925 = vst.msk [vmem:[#allocation3 + $0x30] sm:$0xff] %vm918_vm5, %v883_v21 }
 0x17a   : > { %v772_v56 = vpop.permute.xlu1 %771 }
 0x17b   : > { %805 = vst.msk [vmem:[#allocation3 + $0x78] sm:$0xff] %vm789_vm4, %v772_v56 }
 0x17c   : > { %v885_v57 = vpop.permute.xlu0 %884 }
 0x17d   : > { %926 = vst.msk [vmem:[#allocation3 + $0x38] sm:$0xff] %vm918_vm5, %v885_v57 }
 0x17e   : > { %v899_v59 = vpop.permute.xlu1 %898 }
 0x17f   : > { %933 = vst.msk [vmem:[#allocation3 + $0x70] sm:$0xff] %vm918_vm5, %v899_v59 }
 0x180   : > { %v1012_v60 = vpop.permute.xlu0 %1011 }
 0x181   : > { %1054 = vst.msk [vmem:[#allocation3 + $0x30] sm:$0xff] %vm1047_vm6, %v1012_v60 }
 0x182   : > { %v901_v61 = vpop.permute.xlu1 %900 }
 0x183   : > { %934 = vst.msk [vmem:[#allocation3 + $0x78] sm:$0xff] %vm918_vm5, %v901_v61 }
 0x184   : > { %v1014_v62 = vpop.permute.xlu0 %1013 }
 0x185   : > { %1055 = vst.msk [vmem:[#allocation3 + $0x38] sm:$0xff] %vm1047_vm6, %v1014_v62 }
 0x186   : > { %v1028_v0 = vpop.permute.xlu1 %1027 }
 0x187   : > { %1062 = vst.msk [vmem:[#allocation3 + $0x70] sm:$0xff] %vm1047_vm6, %v1028_v0 }
 0x188   : > { %v1142_v1 = vpop.permute.xlu0 %1141 }
 0x189   : > { %1184 = vst.msk [vmem:[#allocation3 + $0x30] sm:$0xff] %vm1177_vm7, %v1142_v1 }
 0x18a   : > { %v1030_v2 = vpop.permute.xlu1 %1029 }
 0x18b   : > { %1063 = vst.msk [vmem:[#allocation3 + $0x78] sm:$0xff] %vm1047_vm6, %v1030_v2 }
 0x18c   : > { %v1144_v3 = vpop.permute.xlu0 %1143 }
 0x18d   : > { %1185 = vst.msk [vmem:[#allocation3 + $0x38] sm:$0xff] %vm1177_vm7, %v1144_v3 }
 0x18e   : > { %v1158_v4 = vpop.permute.xlu1 %1157 }
 0x18f   : > { %1192 = vst.msk [vmem:[#allocation3 + $0x70] sm:$0xff] %vm1177_vm7, %v1158_v4 }
 0x190   : > { %v1271_v5 = vpop.permute.xlu0 %1270 }
 0x191   : > { %1313 = vst.msk [vmem:[#allocation3 + $0x30] sm:$0xff] %vm1306_vm8, %v1271_v5 }
 0x192   : > { %v1160_v6 = vpop.permute.xlu1 %1159 }
 0x193   : > { %1193 = vst.msk [vmem:[#allocation3 + $0x78] sm:$0xff] %vm1177_vm7, %v1160_v6 }
 0x194   : > { %v1273_v7 = vpop.permute.xlu0 %1272 }
 0x195   : > { %1314 = vst.msk [vmem:[#allocation3 + $0x38] sm:$0xff] %vm1306_vm8, %v1273_v7 }
 0x196   : > { %v1287_v9 = vpop.permute.xlu1 %1286 }
 0x197   : > { %1321 = vst.msk [vmem:[#allocation3 + $0x70] sm:$0xff] %vm1306_vm8, %v1287_v9 }
 0x198   : > { %v1400_v10 = vpop.permute.xlu0 %1399 }
 0x199   : > { %1442 = vst.msk [vmem:[#allocation3 + $0x30] sm:$0xff] %vm1435_vm9, %v1400_v10 }
 0x19a   : > { %v1289_v11 = vpop.permute.xlu1 %1288 }
 0x19b   : > { %1322 = vst.msk [vmem:[#allocation3 + $0x78] sm:$0xff] %vm1306_vm8, %v1289_v11 }
 0x19c   : > { %v1402_v13 = vpop.permute.xlu0 %1401 }
 0x19d   : > { %1443 = vst.msk [vmem:[#allocation3 + $0x38] sm:$0xff] %vm1435_vm9, %v1402_v13 }
 0x19e   : > { %v1416_v14 = vpop.permute.xlu1 %1415 }
 0x19f   : > { %1450 = vst.msk [vmem:[#allocation3 + $0x70] sm:$0xff] %vm1435_vm9, %v1416_v14 }
 0x1a0   : > { %v1458_v15 = vld [vmem:[#allocation3 + $0x30] sm:$0xff] }
 0x1a1   : > { %2003 = vmatprep.mubr.bf16.mxu0 %v1458_v15 }
 0x1a2   : > { %v1418_v16 = vpop.permute.xlu1 %1417 }
 0x1a3   : > { %1451 = vst.msk [vmem:[#allocation3 + $0x78] sm:$0xff] %vm1435_vm9, %v1418_v16 }
 0x1a4   : > { %v1459_v17 = vld [vmem:[#allocation3 + $0x38] sm:$0xff] }
 0x1a5   : > { %2004 = vmatmul.mubr.bf16.gmra.mrb[12].mxu0 %v1459_v17 }
 0x1a6   : > { %v1466_v18 = vld [vmem:[#allocation3 + $0x70] sm:$0xff] }
 0x1a7   : > { %2019 = vmatprep.mubr.bf16.mxu1 %v1466_v18 }
 0x1aa   : > { %v1467_v19 = vld [vmem:[#allocation3 + $0x78] sm:$0xff] }
 0x1ab   : > { %2020 = vmatmul.mubr.bf16.gmra.mrb[12].mxu1 %v1467_v19 }
 0x1bc   : > { %v1993_v20 = vpop.f32.mrb[0].mxu0 }
 0x1bd   : > { %v1695_v22 = vmax.f32 %v1993_v20, 0.0  ;;  %v1566_v23 = vpop.f32.mrb[1].mxu0 }
 0x1be   : > { %v1693_v24 = vmax.f32 %v1566_v23, 0.0  ;;  %v1994_v25 = vpop.f32.mrb[2].mxu0 }
 0x1bf   : > { %1727 = vst [vmem:[%s2733_s19 + $0x10] sm:$0xff] %v1695_v22  ;;  %v1696_v26 = vmax.f32 %v1994_v25, 0.0  ;;  %v1569_v27 = vpop.f32.mrb[3].mxu0 }
 0x1c0   : > { %1725 = vst [vmem:[%s2733_s19] sm:$0xff] %v1693_v24  ;;  %v1694_v8 = vmax.f32 %v1569_v27, 0.0 }
 0x1c1   : > { %1728 = vst [vmem:[%s2733_s19 + $0x18] sm:$0xff] %v1696_v26 }
 0x1c2   : > { %1726 = vst [vmem:[%s2733_s19 + $0x8] sm:$0xff] %v1694_v8  ;;  %v2009_v58 = vpop.f32.mrb[0].mxu1 }
 0x1c3   : > { %v1711_v28 = vmax.f32 %v2009_v58, 0.0  ;;  %v1630_v29 = vpop.f32.mrb[1].mxu1 }
 0x1c4   : > { %v1709_v30 = vmax.f32 %v1630_v29, 0.0  ;;  %v2010_v31 = vpop.f32.mrb[2].mxu1 }
 0x1c5   : > { %1743 = vst [vmem:[%s2733_s19 + $0x90] sm:$0xff] %v1711_v28  ;;  %v1712_v32 = vmax.f32 %v2010_v31, 0.0  ;;  %v1633_v12 = vpop.f32.mrb[3].mxu1 }
 0x1c6   : > { %1741 = vst [vmem:[%s2733_s19 + $0x80] sm:$0xff] %v1709_v30  ;;  %v1710_v63 = vmax.f32 %v1633_v12, 0.0 }
 0x1c7   : > { %1744 = vst [vmem:[%s2733_s19 + $0x98] sm:$0xff] %v1712_v32 }
 0x1c8   : > { %1742 = vst [vmem:[%s2733_s19 + $0x88] sm:$0xff] %v1710_v63 }
 0x1fc   : > { %v1997_v33 = vpop.f32.mrb[4].mxu0 }
 0x1fd   : > { %v1699_v34 = vmax.f32 %v1997_v33, 0.0  ;;  %v1582_v35 = vpop.f32.mrb[5].mxu0 }
 0x1fe   : > { %v1697_v36 = vmax.f32 %v1582_v35, 0.0  ;;  %v1998_v37 = vpop.f32.mrb[6].mxu0 }
 0x1ff   : > { %1731 = vst [vmem:[%s2733_s19 + $0x30] sm:$0xff] %v1699_v34  ;;  %v1700_v38 = vmax.f32 %v1998_v37, 0.0  ;;  %v1585_v39 = vpop.f32.mrb[7].mxu0 }
 0x200   : > { %1729 = vst [vmem:[%s2733_s19 + $0x20] sm:$0xff] %v1697_v36  ;;  %v1698_v40 = vmax.f32 %v1585_v39, 0.0 }
 0x201   : > { %1732 = vst [vmem:[%s2733_s19 + $0x38] sm:$0xff] %v1700_v38 }
 0x202   : > { %1730 = vst [vmem:[%s2733_s19 + $0x28] sm:$0xff] %v1698_v40  ;;  %v2013_v41 = vpop.f32.mrb[4].mxu1 }
 0x203   : > { %v1715_v42 = vmax.f32 %v2013_v41, 0.0  ;;  %v1646_v43 = vpop.f32.mrb[5].mxu1 }
 0x204   : > { %v1713_v45 = vmax.f32 %v1646_v43, 0.0  ;;  %v2014_v47 = vpop.f32.mrb[6].mxu1 }
 0x205   : > { %1747 = vst [vmem:[%s2733_s19 + $0xb0] sm:$0xff] %v1715_v42  ;;  %v1716_v48 = vmax.f32 %v2014_v47, 0.0  ;;  %v1649_v49 = vpop.f32.mrb[7].mxu1 }
 0x206   : > { %1745 = vst [vmem:[%s2733_s19 + $0xa0] sm:$0xff] %v1713_v45  ;;  %v1714_v50 = vmax.f32 %v1649_v49, 0.0 }
 0x207   : > { %1748 = vst [vmem:[%s2733_s19 + $0xb8] sm:$0xff] %v1716_v48 }
 0x208   : > { %1746 = vst [vmem:[%s2733_s19 + $0xa8] sm:$0xff] %v1714_v50 }
 0x23c   : > { %v2001_v51 = vpop.f32.mrb[8].mxu0 }
 0x23d   : > { %v1703_v52 = vmax.f32 %v2001_v51, 0.0  ;;  %v1598_v44 = vpop.f32.mrb[9].mxu0 }
 0x23e   : > { %v1701_v53 = vmax.f32 %v1598_v44, 0.0  ;;  %v2002_v54 = vpop.f32.mrb[10].mxu0 }
 0x23f   : > { %1735 = vst [vmem:[%s2733_s19 + $0x50] sm:$0xff] %v1703_v52  ;;  %v1704_v55 = vmax.f32 %v2002_v54, 0.0  ;;  %v1601_v46 = vpop.f32.mrb[11].mxu0 }
 0x240   : > { %1733 = vst [vmem:[%s2733_s19 + $0x40] sm:$0xff] %v1701_v53  ;;  %v1702_v21 = vmax.f32 %v1601_v46, 0.0 }
 0x241   : > { %1736 = vst [vmem:[%s2733_s19 + $0x58] sm:$0xff] %v1704_v55 }
 0x242   : > { %1734 = vst [vmem:[%s2733_s19 + $0x48] sm:$0xff] %v1702_v21  ;;  %v2017_v56 = vpop.f32.mrb[8].mxu1 }
 0x243   : > { %v1719_v57 = vmax.f32 %v2017_v56, 0.0  ;;  %v1662_v59 = vpop.f32.mrb[9].mxu1 }
 0x244   : > { %v1717_v60 = vmax.f32 %v1662_v59, 0.0  ;;  %v2018_v61 = vpop.f32.mrb[10].mxu1 }
 0x245   : > { %1751 = vst [vmem:[%s2733_s19 + $0xd0] sm:$0xff] %v1719_v57  ;;  %v1720_v62 = vmax.f32 %v2018_v61, 0.0  ;;  %v1665_v0 = vpop.f32.mrb[11].mxu1 }
 0x246   : > { %1749 = vst [vmem:[%s2733_s19 + $0xc0] sm:$0xff] %v1717_v60  ;;  %v1718_v1 = vmax.f32 %v1665_v0, 0.0 }
 0x247   : > { %1752 = vst [vmem:[%s2733_s19 + $0xd8] sm:$0xff] %v1720_v62 }
 0x248   : > { %1750 = vst [vmem:[%s2733_s19 + $0xc8] sm:$0xff] %v1718_v1 }
 0x278   : > { %v2005_v2 = vpop.f32.mrb[12].mxu0 }
 0x279   : > { %v1707_v3 = vmax.f32 %v2005_v2, 0.0  ;;  %v1614_v4 = vpop.f32.mrb[13].mxu0 }
 0x27a   : > { %v1705_v5 = vmax.f32 %v1614_v4, 0.0  ;;  %v2006_v6 = vpop.f32.mrb[14].mxu0 }
 0x27b   : > { %1739 = vst [vmem:[%s2733_s19 + $0x70] sm:$0xff] %v1707_v3  ;;  %v1708_v7 = vmax.f32 %v2006_v6, 0.0  ;;  %v1617_v9 = vpop.f32.mrb[15].mxu0 }
 0x27c   : > { %1737 = vst [vmem:[%s2733_s19 + $0x60] sm:$0xff] %v1705_v5  ;;  %v1706_v10 = vmax.f32 %v1617_v9, 0.0 }
 0x27d   : > { %1740 = vst [vmem:[%s2733_s19 + $0x78] sm:$0xff] %v1708_v7 }
 0x27e   : > { %1738 = vst [vmem:[%s2733_s19 + $0x68] sm:$0xff] %v1706_v10  ;;  %v2021_v11 = vpop.f32.mrb[12].mxu1 }
 0x27f   : > { %v1723_v13 = vmax.f32 %v2021_v11, 0.0  ;;  %v1678_v14 = vpop.f32.mrb[13].mxu1 }
 0x280   : > { %v1721_v15 = vmax.f32 %v1678_v14, 0.0  ;;  %v2022_v16 = vpop.f32.mrb[14].mxu1 }
 0x281   : > { %1755 = vst [vmem:[%s2733_s19 + $0xf0] sm:$0xff] %v1723_v13  ;;  %v1724_v17 = vmax.f32 %v2022_v16, 0.0  ;;  %v1681_v18 = vpop.f32.mrb[15].mxu1 }
 0x282   : > { %1753 = vst [vmem:[%s2733_s19 + $0xe0] sm:$0xff] %v1721_v15  ;;  %v1722_v19 = vmax.f32 %v1681_v18, 0.0 }
 0x283   : > { %1756 = vst [vmem:[%s2733_s19 + $0xf8] sm:$0xff] %v1724_v17 }
 0x284   : > { %1754 = vst [vmem:[%s2733_s19 + $0xe8] sm:$0xff] %v1722_v19 }
 0x285 PF: > { %s12_s11 = sadd.s32 1, %s2103_s11   ;;  %s2779_s9 = smov %s2099_s10 }
 0x286   : > { %p9_p5 = scmp.ge.s32.totalorder %s12_s11, 4   ;;  %s2780_s10 = smov %s2782_s12 }
 0x288   :  { %11 = sbr.rel (!%p9_p5) target bundleno = 2 (0x2), region = 67 }

</bundles_post_ra>
